<compile_context>
chip_gen: v7x
topology: tpu7x:2x2x1
jax: 0.10.0
libtpu: 0.0.40
codegen_flags: <defaults>
</compile_context>

<pallas_src>
import functools

import jax
import jax.numpy as jnp
import numpy as np
from jax.experimental import pallas as pl
from jax.experimental.pallas import tpu as pltpu

EULER_GAMMA = 0.5772156649015329


# ---------------------------------------------------------------------------
# Pallas kernel: everything from `h` -> per-relation log values
# ---------------------------------------------------------------------------
def _minmaxbox_kernel(
    h_ref,       # [TB, T, D]    (f32 or bf16 storage)
    e1_ref,      # [TB, T]       f32 0/1 mask
    e2_ref,      # [TB, T]       f32 0/1 mask
    w1a_ref,     # [D, 2D]       layer1.weight.T rows for e1_vec
    w1b_ref,     # [D, 2D]       layer1.weight.T rows for e2_vec
    b1_ref,      # [1, 2D]
    w2min_ref,   # [2D, dim]     layer2.weight.T cols for the "min" half
    w2max_ref,   # [2D, dim]     layer2.weight.T cols for the "max" half
    b2min_ref,   # [1, dim]
    b2max_ref,   # [1, dim]
    relz_ref,    # [1, R1*dim]   min(rel_min, rel_max), flattened (rel-major)
    relZ_ref,    # [1, R1*dim]   max(rel_min, rel_max), flattened
    seg_ref,     # [R1*dim, OUT_W]  0/1 per-relation segment-sum selector
    out_ref,     # [TB, OUT_W]
    *,
    n_rel_boxes,
    volume_temp,
    intersection_temp,
    softplus_const,
    multi_label,
):
    f32 = jnp.float32

    # ---- masked max-pool over the sequence axis ----------------------------
    # h may be stored bf16 in HBM (halves DMA); upcast right after the load so
    # all arithmetic (incl. on v5e, which has no bf16 VPU path) runs in f32.
    h = h_ref[...].astype(f32)
    e1_vec = jnp.max(h * e1_ref[...][:, :, None], axis=1)        # [TB, D]
    e2_vec = jnp.max(h * e2_ref[...][:, :, None], axis=1)        # [TB, D]

    # ---- layer1: split weights -> no lane-concat of [e1|e2] ----------------
    hid = (jnp.dot(e1_vec, w1a_ref[...], preferred_element_type=f32)
           + jnp.dot(e2_vec, w1b_ref[...], preferred_element_type=f32)
           + b1_ref[...])
    hid = jnp.maximum(hid, 0.0)                                   # ReLU

    # ---- layer2: split output halves -> no lane-slice of [min|max] ---------
    box_a = jnp.dot(hid, w2min_ref[...],
                    preferred_element_type=f32) + b2min_ref[...]  # [TB, dim]
    box_b = jnp.dot(hid, w2max_ref[...],
                    preferred_element_type=f32) + b2max_ref[...]  # [TB, dim]

    # ---- param2minmax -------------------------------------------------------
    in_z = jnp.minimum(box_a, box_b)                              # [TB, dim]
    in_Z = jnp.maximum(box_a, box_b)

    # ---- gumbel intersection on a lane-dense [TB, R1*dim] layout -----------
    # (relation axis folded onto lanes: ~R1x better vreg occupancy than the
    #  3-D [TB, R1, dim] layout when dim << 128)
    in_z_rep = jnp.concatenate([in_z] * n_rel_boxes, axis=-1)     # [TB, R1*dim]
    in_Z_rep = jnp.concatenate([in_Z] * n_rel_boxes, axis=-1)
    rel_z = relz_ref[...]                                         # [1, R1*dim]
    rel_Z = relZ_ref[...]

    t = intersection_temp

    def _logaddexp(a, b):
        # one exp + one log1p (NaN only if both args are -inf; unreachable here)
        m = jnp.maximum(a, b)
        return m + jnp.log1p(jnp.exp(-jnp.abs(a - b)))

    meet_z = t * _logaddexp(in_z_rep / t, rel_z / t)
    meet_Z = -t * _logaddexp(-in_Z_rep / t, -rel_Z / t)
    meet_z = jnp.maximum(meet_z, jnp.maximum(in_z_rep, rel_z))
    meet_Z = jnp.minimum(meet_Z, jnp.minimum(in_Z_rep, rel_Z))

    vt = volume_temp

    def _log_softplus(z, Z):
        # log(softplus_{beta=1/vt}(Z - z - c)), softplus via one exp + log1p
        u = (Z - z - softplus_const) / vt
        return jnp.log(vt * (jnp.maximum(u, 0.0) + jnp.log1p(jnp.exp(-jnp.abs(u)))))

    log_sp = _log_softplus(meet_z, meet_Z)                        # [TB, R1*dim]

    # Per-relation sum over the box dim as one tiny MXU matmul against a 0/1
    # selector already padded to the lane-dense output width -> the final
    # store below is an unmasked full-lane vst.
    log_overlap = jnp.dot(log_sp, seg_ref[...],
                          preferred_element_type=f32)             # [TB, OUT_W]

    if multi_label:
        # log_rhs is relation-independent: compute once on the un-broadcast
        # [TB, dim] input box and broadcast the [TB, 1] result.
        log_rhs = jnp.sum(_log_softplus(in_z, in_Z), axis=-1, keepdims=True)
        out_ref[...] = log_overlap - log_rhs
    else:
        out_ref[...] = log_overlap


# ---------------------------------------------------------------------------
# Wrapper
# ---------------------------------------------------------------------------
def minmaxbox_forward_pallas(h, e1_ind, e2_ind, params, *, dim, volume_temp,
                             intersection_temp, multi_label=True,
                             tile_b=None, store_dtype=None):
    """Forward pass of MinMaxBox (post-encoder) as one Pallas TPU kernel."""
    w1, b1, w2, b2, rel_min, rel_max = params
    B, T, D = h.shape
    R1 = int(rel_min.shape[0])
    dim = int(dim)
    out_w = ((max(R1, 128) + 127) // 128) * 128     # lane-dense output width
    f32 = jnp.float32

    # h storage dtype: keep the caller's dtype by default; pass/feed bf16 on
    # v6e/v7x to halve HBM traffic + VMEM. Arithmetic always stays f32.
    store_dtype = jnp.dtype(h.dtype if store_dtype is None else store_dtype)
    h_s = jnp.asarray(h, store_dtype)
    e1_s = jnp.asarray(e1_ind, f32)   # masks are tiny: keep f32 (8-sublane tile)
    e2_s = jnp.asarray(e2_ind, f32)

    # --- parameter plumbing (glue): PyTorch Linear computes x @ W.T + b -----
    w1t = jnp.asarray(w1, f32).T                    # [2D, 2D]
    w1a, w1b = w1t[:D], w1t[D:]                     # split -> no in-kernel concat
    b1r = jnp.asarray(b1, f32).reshape(1, -1)
    w2t = jnp.asarray(w2, f32).T                    # [2D, 2*dim]
    w2min, w2max = w2t[:, :dim], w2t[:, dim:]       # split -> no in-kernel slice
    b2r = jnp.asarray(b2, f32).reshape(1, -1)
    b2min, b2max = b2r[:, :dim], b2r[:, dim:]
    rel_min = jnp.asarray(rel_min, f32)
    rel_max = jnp.asarray(rel_max, f32)
    rel_z = jnp.minimum(rel_min, rel_max).reshape(1, R1 * dim)   # param2minmax
    rel_Z = jnp.maximum(rel_min, rel_max).reshape(1, R1 * dim)
    # 0/1 selector for the per-relation segment sum, padded to out_w lanes
    seg = jnp.asarray(
        (np.arange(R1 * dim)[:, None] // dim == np.arange(out_w)[None, :])
        .astype(np.float32))

    const_inputs = (w1a, w1b, b1r, w2min, w2max, b2min, b2max, rel_z, rel_Z, seg)

    # --- generation-aware batch tile & VMEM budget ---------------------------
    try:
        kind = jax.devices()[0].device_kind.lower()
    except Exception:
        kind = ""
    if "v7" in kind:
        vmem_budget, hard_cap, pref_tile = 44 * 2**20, 60 * 2**20, 256   # 64 MiB phys
    elif "v6" in kind:
        vmem_budget, hard_cap, pref_tile = 96 * 2**20, 120 * 2**20, 256  # 128 MiB phys
    else:                                                                # v5e / other
        vmem_budget, hard_cap, pref_tile = 96 * 2**20, 120 * 2**20, 128

    const_bytes = 2 * sum(int(a.size) * a.dtype.itemsize for a in const_inputs)
    per_row_bytes = (
        2 * T * D * store_dtype.itemsize   # h tile (double-buffered)
        + 2 * 2 * T * 4                    # e1/e2 mask tiles (double-buffered)
        + 2 * out_w * 4                    # output tile (double-buffered)
        + 3 * T * D * 4                    # f32 upcast / masked copies of h
        + 16 * R1 * dim * 4                # intersection / volume temporaries
        + 16 * D * 4)                      # pooled vectors + MLP temporaries

    def _fit_tile(tb):
        while tb > 8 and const_bytes + tb * per_row_bytes > vmem_budget:
            tb = max(8, (tb // 2) // 8 * 8)
        return tb

    if tile_b is None:
        if B <= 8:
            tile_b = B
        else:
            tile_b = _fit_tile(min(pref_tile, (B // 8) * 8))
            # keep >= 2 grid steps so ("parallel",) can use both v7x TensorCores
            if pl.cdiv(B, tile_b) < 2 and B >= 16:
                tile_b = max(8, (pl.cdiv(B, 2) + 7) // 8 * 8)
    else:
        tile_b = max(1, min(int(tile_b), B))
        if tile_b < B and tile_b % 8 != 0:      # sublane rule on 2-D mask/out blocks
            tile_b = min(B, max(8, (tile_b // 8) * 8))

    grid = (pl.cdiv(B, tile_b),)
    footprint = const_bytes + tile_b * per_row_bytes
    vmem_limit = int(min(hard_cap, max(16 * 2**20, int(footprint * 1.25))))

    kernel = functools.partial(
        _minmaxbox_kernel,
        n_rel_boxes=R1,
        volume_temp=float(volume_temp),
        intersection_temp=float(intersection_temp),
        softplus_const=float(2.0 * intersection_temp * EULER_GAMMA),
        multi_label=bool(multi_label))

    def _const_spec(shape, single_buffer):
        idx = lambda i: (0,) * len(shape)
        if single_buffer:
            # resident operand: 1 buffer instead of the default 2
            return pl.BlockSpec(shape, idx, pipeline_mode=pl.Buffered(1))
        return pl.BlockSpec(shape, idx)

    def _run(single_buffer_consts):
        in_specs = [
            # batch-tiled tensors (pipelined / double-buffered by Pallas)
            pl.BlockSpec((tile_b, T, D), lambda i: (i, 0, 0)),
            pl.BlockSpec((tile_b, T), lambda i: (i, 0)),
            pl.BlockSpec((tile_b, T), lambda i: (i, 0)),
        ] + [_const_spec(a.shape, single_buffer_consts) for a in const_inputs]
        return pl.pallas_call(
            kernel,
            out_shape=jax.ShapeDtypeStruct((B, out_w), jnp.float32),
            grid=grid,
            in_specs=in_specs,
            out_specs=pl.BlockSpec((tile_b, out_w), lambda i: (i, 0)),
            compiler_params=pltpu.CompilerParams(
                dimension_semantics=("parallel",),
                vmem_limit_bytes=vmem_limit),
        )(h_s, e1_s, e2_s, *const_inputs)

    try:
        out_full = _run(True)
    except Exception:
        # pipeline_mode=pl.Buffered(1) not supported on this jax build:
        # fall back to default double-buffered constants (same semantics).
        out_full = _run(False)

    # padded lanes + the multi_label [:, :-1] slice are handled in (free) XLA
    if multi_label:
        return out_full[:, :R1 - 1]
    return out_full[:, :R1]


# ---------------------------------------------------------------------------
# Pure-JAX reference (mirrors the PyTorch forward exactly)
# ---------------------------------------------------------------------------
def minmaxbox_forward_ref(h, e1_ind, e2_ind, params, *, dim, volume_temp,
                          intersection_temp, multi_label=True):
    w1, b1, w2, b2, rel_min, rel_max = params
    sp_const = 2.0 * intersection_temp * EULER_GAMMA

    e1_vec = jnp.max(h * e1_ind[:, :, None], axis=1)
    e2_vec = jnp.max(h * e2_ind[:, :, None], axis=1)
    x = jnp.concatenate([e1_vec, e2_vec], axis=1)
    hid = jnp.maximum(x @ w1.T + b1, 0.0)
    boxes = hid @ w2.T + b2
    in_min, in_max = boxes[:, :dim], boxes[:, dim:]
    in_z = jnp.minimum(in_min, in_max)[:, None, :]
    in_Z = jnp.maximum(in_min, in_max)[:, None, :]
    rel_z = jnp.minimum(rel_min, rel_max)[None, :, :]
    rel_Z = jnp.maximum(rel_min, rel_max)[None, :, :]
    t = intersection_temp
    meet_z = t * jnp.logaddexp(in_z / t, rel_z / t)
    meet_Z = -t * jnp.logaddexp(-in_Z / t, -rel_Z / t)
    meet_z = jnp.maximum(meet_z, jnp.maximum(in_z, rel_z))
    meet_Z = jnp.minimum(meet_Z, jnp.minimum(in_Z, rel_Z))

    def log_vol(z, Z):
        sp = volume_temp * jax.nn.softplus((Z - z - sp_const) / volume_temp)
        return jnp.sum(jnp.log(sp), axis=-1)

    log_overlap = log_vol(meet_z, meet_Z)
    log_rhs = log_vol(jnp.broadcast_to(in_z, meet_z.shape),
                      jnp.broadcast_to(in_Z, meet_Z.shape))
    if multi_label:
        return log_overlap[:, :-1] - log_rhs[:, :-1]
    return log_overlap


# ---------------------------------------------------------------------------
# Main
# ---------------------------------------------------------------------------
if __name__ == "__main__":
    B, T = 2, 8          # batch, seq length
    D = 32               # encoder hidden size
    dim = 16             # box dimension
    num_rel = 4          # -> num_rel + 1 = 5 relation boxes
    R1 = num_rel + 1
    volume_temp = 1.0
    intersection_temp = 0.1
    multi_label = True
    vocab = 50

    key = jax.random.PRNGKey(0)
    keys = jax.random.split(key, 16)

    # Deterministic parameters (shapes per module __init__)
    w1 = jax.random.normal(keys[0], (2 * D, 2 * D), jnp.float32) * 0.05
    b1 = jax.random.normal(keys[1], (2 * D,), jnp.float32) * 0.05
    w2 = jax.random.normal(keys[2], (2 * dim, 2 * D), jnp.float32) * 0.05
    b2 = jax.random.normal(keys[3], (2 * dim,), jnp.float32) * 0.05
    rel_min = jax.random.uniform(keys[4], (R1, dim), jnp.float32) * 0.1 - 0.1
    rel_max = jax.random.uniform(keys[5], (R1, dim), jnp.float32) * 0.1
    params = (w1, b1, w2, b2, rel_min, rel_max)

    # Example inputs matching the module's forward signature
    input_ids = jax.random.randint(keys[6], (B, T), 0, vocab)
    token_type_ids = jnp.zeros((B, T), jnp.int32)
    attention_mask = jnp.ones((B, T), jnp.int32)
    ep_mask = jnp.zeros((B, T, T), jnp.float32)   # unused by the forward pass
    e1_indicator = jnp.zeros((B, T), jnp.float32).at[:, 1:3].set(1.0)
    e2_indicator = jnp.zeros((B, T), jnp.float32).at[:, 4:6].set(1.0)

    # Deterministic encoder stand-in (glue, not a Pallas hot path).
    # TODO(synk): pretrained HuggingFace AutoModel encoder is not translatable.
    tok_emb = jax.random.normal(keys[7], (vocab, D), jnp.float32) * 0.1
    type_emb = jax.random.normal(keys[8], (2, D), jnp.float32) * 0.1
    h = tok_emb[input_ids] + type_emb[token_type_ids]
    h = h * attention_mask[:, :, None].astype(jnp.float32)

    common = dict(dim=dim, volume_temp=volume_temp,
                  intersection_temp=intersection_temp, multi_label=multi_label)

    # --- test 1: f32 storage, B=2 (strict check vs. PyTorch semantics) ------
    out = jax.block_until_ready(
        minmaxbox_forward_pallas(h, e1_indicator, e2_indicator, params, **common))
    ref = minmaxbox_forward_ref(h, e1_indicator, e2_indicator, params, **common)
    np.testing.assert_allclose(np.asarray(out), np.asarray(ref),
                               rtol=1e-5, atol=1e-5)
    assert out.shape == (B, num_rel if multi_label else R1)

    # --- test 2: bf16 h storage + multi-step batch grid (B=16 -> tile_b=8) --
    B2 = 16
    input_ids2 = jax.random.randint(keys[9], (B2, T), 0, vocab)
    e1_ind2 = jnp.zeros((B2, T), jnp.float32).at[:, 0:2].set(1.0)
    e2_ind2 = jnp.zeros((B2, T), jnp.float32).at[:, 3:6].set(1.0)
    h2 = tok_emb[input_ids2] + type_emb[jnp.zeros((B2, T), jnp.int32)]
    h2_bf16 = h2.astype(jnp.bfloat16)

    out2 = jax.block_until_ready(
        minmaxbox_forward_pallas(h2_bf16, e1_ind2, e2_ind2, params, **common))
    ref2 = minmaxbox_forward_ref(h2_bf16.astype(jnp.float32), e1_ind2, e2_ind2,
                                 params, **common)
    np.testing.assert_allclose(np.asarray(out2), np.asarray(ref2),
                               rtol=1e-5, atol=1e-5)
    assert out2.shape == (B2, num_rel if multi_label else R1)

    print("KERNEL_OK")
</pallas_src>

<mosaic_0001>
module attributes {stable_mosaic.version = 11 : i64} {
  func.func @_minmaxbox_kernel(%arg0: i32, %arg1: memref<2x8x32xf32, #tpu.memory_space<vmem>>, %arg2: memref<2x8xf32, #tpu.memory_space<vmem>>, %arg3: memref<2x8xf32, #tpu.memory_space<vmem>>, %arg4: memref<32x64xf32, #tpu.memory_space<vmem>>, %arg5: memref<32x64xf32, #tpu.memory_space<vmem>>, %arg6: memref<1x64xf32, #tpu.memory_space<vmem>>, %arg7: memref<64x16xf32, #tpu.memory_space<vmem>>, %arg8: memref<64x16xf32, #tpu.memory_space<vmem>>, %arg9: memref<1x16xf32, #tpu.memory_space<vmem>>, %arg10: memref<1x16xf32, #tpu.memory_space<vmem>>, %arg11: memref<1x80xf32, #tpu.memory_space<vmem>>, %arg12: memref<1x80xf32, #tpu.memory_space<vmem>>, %arg13: memref<80x128xf32, #tpu.memory_space<vmem>>, %arg14: memref<2x128xf32, #tpu.memory_space<vmem>>) attributes {dimension_semantics = [#tpu.dimension_semantics<parallel>], iteration_bounds = array<i64: 1>, scalar_prefetch = 0 : i64, scratch_operands = 0 : i64, tpu.core_type = #tpu.core_type<tc>, window_params = [{transform_indices = @transform_0, window_bounds = array<i64: 2, 8, 32>}, {transform_indices = @transform_1, window_bounds = array<i64: 2, 8>}, {transform_indices = @transform_2, window_bounds = array<i64: 2, 8>}, {pipeline_mode = #tpu.pipeline_mode<synchronous>, transform_indices = @transform_3, window_bounds = array<i64: 32, 64>}, {pipeline_mode = #tpu.pipeline_mode<synchronous>, transform_indices = @transform_4, window_bounds = array<i64: 32, 64>}, {pipeline_mode = #tpu.pipeline_mode<synchronous>, transform_indices = @transform_5, window_bounds = array<i64: 1, 64>}, {pipeline_mode = #tpu.pipeline_mode<synchronous>, transform_indices = @transform_6, window_bounds = array<i64: 64, 16>}, {pipeline_mode = #tpu.pipeline_mode<synchronous>, transform_indices = @transform_7, window_bounds = array<i64: 64, 16>}, {pipeline_mode = #tpu.pipeline_mode<synchronous>, transform_indices = @transform_8, window_bounds = array<i64: 1, 16>}, {pipeline_mode = #tpu.pipeline_mode<synchronous>, transform_indices = @transform_9, window_bounds = array<i64: 1, 16>}, {pipeline_mode = #tpu.pipeline_mode<synchronous>, transform_indices = @transform_10, window_bounds = array<i64: 1, 80>}, {pipeline_mode = #tpu.pipeline_mode<synchronous>, transform_indices = @transform_11, window_bounds = array<i64: 1, 80>}, {pipeline_mode = #tpu.pipeline_mode<synchronous>, transform_indices = @transform_12, window_bounds = array<i64: 80, 128>}, {transform_indices = @transform_13, window_bounds = array<i64: 2, 128>}]} {
    %c0 = arith.constant 0 : index
    %c0_0 = arith.constant 0 : index
    %c0_1 = arith.constant 0 : index
    %0 = vector.load %arg1[%c0, %c0_0, %c0_1] : memref<2x8x32xf32, #tpu.memory_space<vmem>>, vector<2x8x32xf32>
    %c0_2 = arith.constant 0 : index
    %c0_3 = arith.constant 0 : index
    %1 = vector.load %arg2[%c0_2, %c0_3] : memref<2x8xf32, #tpu.memory_space<vmem>>, vector<2x8xf32>
    %2 = vector.shape_cast %1 : vector<2x8xf32> to vector<2x8x1xf32>
    %3 = vector.broadcast %2 : vector<2x8x1xf32> to vector<2x8x32xf32>
    %4 = arith.mulf %0, %3 : vector<2x8x32xf32>
    %cst = arith.constant dense<0xFF800000> : vector<2x32xf32>
    %5 = vector.multi_reduction <maximumf>, %4, %cst [1] : vector<2x8x32xf32> to vector<2x32xf32>
    %c0_4 = arith.constant 0 : index
    %c0_5 = arith.constant 0 : index
    %6 = vector.load %arg3[%c0_4, %c0_5] : memref<2x8xf32, #tpu.memory_space<vmem>>, vector<2x8xf32>
    %7 = vector.shape_cast %6 : vector<2x8xf32> to vector<2x8x1xf32>
    %8 = vector.broadcast %7 : vector<2x8x1xf32> to vector<2x8x32xf32>
    %9 = arith.mulf %0, %8 : vector<2x8x32xf32>
    %cst_6 = arith.constant dense<0xFF800000> : vector<2x32xf32>
    %10 = vector.multi_reduction <maximumf>, %9, %cst_6 [1] : vector<2x8x32xf32> to vector<2x32xf32>
    %c0_7 = arith.constant 0 : index
    %c0_8 = arith.constant 0 : index
    %11 = vector.load %arg4[%c0_7, %c0_8] : memref<32x64xf32, #tpu.memory_space<vmem>>, vector<32x64xf32>
    %cst_9 = arith.constant dense<0.000000e+00> : vector<2x64xf32>
    %12 = tpu.matmul %5, %11, %cst_9 {dimension_numbers = #tpu.dot_dimension_numbers<[1], [0], [0], [1], [0, 0, 1, 1], [], []>} : vector<2x32xf32>, vector<32x64xf32>, vector<2x64xf32> -> vector<2x64xf32>
    %c0_10 = arith.constant 0 : index
    %c0_11 = arith.constant 0 : index
    %13 = vector.load %arg5[%c0_10, %c0_11] : memref<32x64xf32, #tpu.memory_space<vmem>>, vector<32x64xf32>
    %cst_12 = arith.constant dense<0.000000e+00> : vector<2x64xf32>
    %14 = tpu.matmul %10, %13, %cst_12 {dimension_numbers = #tpu.dot_dimension_numbers<[1], [0], [0], [1], [0, 0, 1, 1], [], []>} : vector<2x32xf32>, vector<32x64xf32>, vector<2x64xf32> -> vector<2x64xf32>
    %15 = arith.addf %12, %14 : vector<2x64xf32>
    %c0_13 = arith.constant 0 : index
    %c0_14 = arith.constant 0 : index
    %16 = vector.load %arg6[%c0_13, %c0_14] : memref<1x64xf32, #tpu.memory_space<vmem>>, vector<1x64xf32>
    %17 = vector.broadcast %16 : vector<1x64xf32> to vector<2x64xf32>
    %18 = arith.addf %15, %17 : vector<2x64xf32>
    %cst_15 = arith.constant 0.000000e+00 : f32
    %19 = vector.broadcast %cst_15 : f32 to vector<2x64xf32>
    %20 = arith.maximumf %18, %19 : vector<2x64xf32>
    %c0_16 = arith.constant 0 : index
    %c0_17 = arith.constant 0 : index
    %21 = vector.load %arg7[%c0_16, %c0_17] : memref<64x16xf32, #tpu.memory_space<vmem>>, vector<64x16xf32>
    %cst_18 = arith.constant dense<0.000000e+00> : vector<2x16xf32>
    %22 = tpu.matmul %20, %21, %cst_18 {dimension_numbers = #tpu.dot_dimension_numbers<[1], [0], [0], [1], [0, 0, 1, 1], [], []>} : vector<2x64xf32>, vector<64x16xf32>, vector<2x16xf32> -> vector<2x16xf32>
    %c0_19 = arith.constant 0 : index
    %c0_20 = arith.constant 0 : index
    %23 = vector.load %arg9[%c0_19, %c0_20] : memref<1x16xf32, #tpu.memory_space<vmem>>, vector<1x16xf32>
    %24 = vector.broadcast %23 : vector<1x16xf32> to vector<2x16xf32>
    %25 = arith.addf %22, %24 : vector<2x16xf32>
    %c0_21 = arith.constant 0 : index
    %c0_22 = arith.constant 0 : index
    %26 = vector.load %arg8[%c0_21, %c0_22] : memref<64x16xf32, #tpu.memory_space<vmem>>, vector<64x16xf32>
    %cst_23 = arith.constant dense<0.000000e+00> : vector<2x16xf32>
    %27 = tpu.matmul %20, %26, %cst_23 {dimension_numbers = #tpu.dot_dimension_numbers<[1], [0], [0], [1], [0, 0, 1, 1], [], []>} : vector<2x64xf32>, vector<64x16xf32>, vector<2x16xf32> -> vector<2x16xf32>
    %c0_24 = arith.constant 0 : index
    %c0_25 = arith.constant 0 : index
    %28 = vector.load %arg10[%c0_24, %c0_25] : memref<1x16xf32, #tpu.memory_space<vmem>>, vector<1x16xf32>
    %29 = vector.broadcast %28 : vector<1x16xf32> to vector<2x16xf32>
    %30 = arith.addf %27, %29 : vector<2x16xf32>
    %31 = arith.minimumf %25, %30 : vector<2x16xf32>
    %32 = arith.maximumf %25, %30 : vector<2x16xf32>
    %33 = tpu.concatenate %31, %31, %31, %31, %31 in 1 : vector<2x16xf32>, vector<2x16xf32>, vector<2x16xf32>, vector<2x16xf32>, vector<2x16xf32> -> vector<2x80xf32>
    %34 = tpu.concatenate %32, %32, %32, %32, %32 in 1 : vector<2x16xf32>, vector<2x16xf32>, vector<2x16xf32>, vector<2x16xf32>, vector<2x16xf32> -> vector<2x80xf32>
    %c0_26 = arith.constant 0 : index
    %c0_27 = arith.constant 0 : index
    %35 = vector.load %arg11[%c0_26, %c0_27] : memref<1x80xf32, #tpu.memory_space<vmem>>, vector<1x80xf32>
    %c0_28 = arith.constant 0 : index
    %c0_29 = arith.constant 0 : index
    %36 = vector.load %arg12[%c0_28, %c0_29] : memref<1x80xf32, #tpu.memory_space<vmem>>, vector<1x80xf32>
    %cst_30 = arith.constant 1.000000e-01 : f32
    %37 = vector.broadcast %cst_30 : f32 to vector<2x80xf32>
    %38 = arith.divf %33, %37 : vector<2x80xf32>
    %cst_31 = arith.constant 1.000000e-01 : f32
    %39 = vector.broadcast %cst_31 : f32 to vector<1x80xf32>
    %40 = arith.divf %35, %39 : vector<1x80xf32>
    %41 = vector.broadcast %40 : vector<1x80xf32> to vector<2x80xf32>
    %42 = arith.maximumf %38, %41 : vector<2x80xf32>
    %43 = vector.broadcast %40 : vector<1x80xf32> to vector<2x80xf32>
    %44 = arith.subf %38, %43 : vector<2x80xf32>
    %45 = math.absf %44 : vector<2x80xf32>
    %cst_32 = arith.constant 0.000000e+00 : f32
    %46 = vector.broadcast %cst_32 : f32 to vector<2x80xf32>
    %47 = arith.subf %46, %45 : vector<2x80xf32>
    %48 = math.exp %47 : vector<2x80xf32>
    %49 = math.log1p %48 : vector<2x80xf32>
    %50 = arith.addf %42, %49 : vector<2x80xf32>
    %cst_33 = arith.constant 1.000000e-01 : f32
    %51 = vector.broadcast %cst_33 : f32 to vector<2x80xf32>
    %52 = arith.mulf %51, %50 : vector<2x80xf32>
    %cst_34 = arith.constant 0.000000e+00 : f32
    %53 = vector.broadcast %cst_34 : f32 to vector<2x80xf32>
    %54 = arith.subf %53, %34 : vector<2x80xf32>
    %cst_35 = arith.constant 1.000000e-01 : f32
    %55 = vector.broadcast %cst_35 : f32 to vector<2x80xf32>
    %56 = arith.divf %54, %55 : vector<2x80xf32>
    %cst_36 = arith.constant 0.000000e+00 : f32
    %57 = vector.broadcast %cst_36 : f32 to vector<1x80xf32>
    %58 = arith.subf %57, %36 : vector<1x80xf32>
    %cst_37 = arith.constant 1.000000e-01 : f32
    %59 = vector.broadcast %cst_37 : f32 to vector<1x80xf32>
    %60 = arith.divf %58, %59 : vector<1x80xf32>
    %61 = vector.broadcast %60 : vector<1x80xf32> to vector<2x80xf32>
    %62 = arith.maximumf %56, %61 : vector<2x80xf32>
    %63 = vector.broadcast %60 : vector<1x80xf32> to vector<2x80xf32>
    %64 = arith.subf %56, %63 : vector<2x80xf32>
    %65 = math.absf %64 : vector<2x80xf32>
    %cst_38 = arith.constant 0.000000e+00 : f32
    %66 = vector.broadcast %cst_38 : f32 to vector<2x80xf32>
    %67 = arith.subf %66, %65 : vector<2x80xf32>
    %68 = math.exp %67 : vector<2x80xf32>
    %69 = math.log1p %68 : vector<2x80xf32>
    %70 = arith.addf %62, %69 : vector<2x80xf32>
    %cst_39 = arith.constant -1.000000e-01 : f32
    %71 = vector.broadcast %cst_39 : f32 to vector<2x80xf32>
    %72 = arith.mulf %71, %70 : vector<2x80xf32>
    %73 = vector.broadcast %35 : vector<1x80xf32> to vector<2x80xf32>
    %74 = arith.maximumf %33, %73 : vector<2x80xf32>
    %75 = arith.maximumf %52, %74 : vector<2x80xf32>
    %76 = vector.broadcast %36 : vector<1x80xf32> to vector<2x80xf32>
    %77 = arith.minimumf %34, %76 : vector<2x80xf32>
    %78 = arith.minimumf %72, %77 : vector<2x80xf32>
    %79 = arith.subf %78, %75 : vector<2x80xf32>
    %cst_40 = arith.constant 0.115443133 : f32
    %80 = vector.broadcast %cst_40 : f32 to vector<2x80xf32>
    %81 = arith.subf %79, %80 : vector<2x80xf32>
    %cst_41 = arith.constant 1.000000e+00 : f32
    %82 = vector.broadcast %cst_41 : f32 to vector<2x80xf32>
    %83 = arith.divf %81, %82 : vector<2x80xf32>
    %cst_42 = arith.constant 0.000000e+00 : f32
    %84 = vector.broadcast %cst_42 : f32 to vector<2x80xf32>
    %85 = arith.maximumf %83, %84 : vector<2x80xf32>
    %86 = math.absf %83 : vector<2x80xf32>
    %cst_43 = arith.constant 0.000000e+00 : f32
    %87 = vector.broadcast %cst_43 : f32 to vector<2x80xf32>
    %88 = arith.subf %87, %86 : vector<2x80xf32>
    %89 = math.exp %88 : vector<2x80xf32>
    %90 = math.log1p %89 : vector<2x80xf32>
    %91 = arith.addf %85, %90 : vector<2x80xf32>
    %cst_44 = arith.constant 1.000000e+00 : f32
    %92 = vector.broadcast %cst_44 : f32 to vector<2x80xf32>
    %93 = arith.mulf %92, %91 : vector<2x80xf32>
    %94 = math.log %93 : vector<2x80xf32>
    %c0_45 = arith.constant 0 : index
    %c0_46 = arith.constant 0 : index
    %95 = vector.load %arg13[%c0_45, %c0_46] : memref<80x128xf32, #tpu.memory_space<vmem>>, vector<80x128xf32>
    %cst_47 = arith.constant dense<0.000000e+00> : vector<2x128xf32>
    %96 = tpu.matmul %94, %95, %cst_47 {dimension_numbers = #tpu.dot_dimension_numbers<[1], [0], [0], [1], [0, 0, 1, 1], [], []>} : vector<2x80xf32>, vector<80x128xf32>, vector<2x128xf32> -> vector<2x128xf32>
    %97 = arith.subf %32, %31 : vector<2x16xf32>
    %cst_48 = arith.constant 0.115443133 : f32
    %98 = vector.broadcast %cst_48 : f32 to vector<2x16xf32>
    %99 = arith.subf %97, %98 : vector<2x16xf32>
    %cst_49 = arith.constant 1.000000e+00 : f32
    %100 = vector.broadcast %cst_49 : f32 to vector<2x16xf32>
    %101 = arith.divf %99, %100 : vector<2x16xf32>
    %cst_50 = arith.constant 0.000000e+00 : f32
    %102 = vector.broadcast %cst_50 : f32 to vector<2x16xf32>
    %103 = arith.maximumf %101, %102 : vector<2x16xf32>
    %104 = math.absf %101 : vector<2x16xf32>
    %cst_51 = arith.constant 0.000000e+00 : f32
    %105 = vector.broadcast %cst_51 : f32 to vector<2x16xf32>
    %106 = arith.subf %105, %104 : vector<2x16xf32>
    %107 = math.exp %106 : vector<2x16xf32>
    %108 = math.log1p %107 : vector<2x16xf32>
    %109 = arith.addf %103, %108 : vector<2x16xf32>
    %cst_52 = arith.constant 1.000000e+00 : f32
    %110 = vector.broadcast %cst_52 : f32 to vector<2x16xf32>
    %111 = arith.mulf %110, %109 : vector<2x16xf32>
    %112 = math.log %111 : vector<2x16xf32>
    %cst_53 = arith.constant dense<0.000000e+00> : vector<2xf32>
    %113 = vector.multi_reduction <add>, %112, %cst_53 [1] : vector<2x16xf32> to vector<2xf32>
    %114 = vector.shape_cast %113 : vector<2xf32> to vector<2x1xf32>
    %115 = vector.broadcast %114 : vector<2x1xf32> to vector<2x128xf32>
    %116 = arith.subf %96, %115 : vector<2x128xf32>
    %c0_54 = arith.constant 0 : index
    %c0_55 = arith.constant 0 : index
    %117 = vector.load %arg14[%c0_54, %c0_55] : memref<2x128xf32, #tpu.memory_space<vmem>>, vector<2x128xf32>
    tpu.vector_store %arg14[%c0_54, %c0_55], %116 {strides = array<i32>} : memref<2x128xf32, #tpu.memory_space<vmem>>, vector<2x128xf32>,
    return
  }
  func.func @transform_0(%arg0: i32) -> (i32, i32, i32) {
    %c0_i32 = arith.constant 0 : i32
    %c0_i32_0 = arith.constant 0 : i32
    %c0_i32_1 = arith.constant 0 : i32
    return %arg0, %c0_i32, %c0_i32_0 : i32, i32, i32
  }
  func.func @transform_1(%arg0: i32) -> (i32, i32) {
    %c0_i32 = arith.constant 0 : i32
    %c0_i32_0 = arith.constant 0 : i32
    return %arg0, %c0_i32 : i32, i32
  }
  func.func @transform_2(%arg0: i32) -> (i32, i32) {
    %c0_i32 = arith.constant 0 : i32
    %c0_i32_0 = arith.constant 0 : i32
    return %arg0, %c0_i32 : i32, i32
  }
  func.func @transform_3(%arg0: i32) -> (i32, i32) {
    %c0_i32 = arith.constant 0 : i32
    %c0_i32_0 = arith.constant 0 : i32
    %c0_i32_1 = arith.constant 0 : i32
    return %c0_i32, %c0_i32_0 : i32, i32
  }
  func.func @transform_4(%arg0: i32) -> (i32, i32) {
    %c0_i32 = arith.constant 0 : i32
    %c0_i32_0 = arith.constant 0 : i32
    %c0_i32_1 = arith.constant 0 : i32
    return %c0_i32, %c0_i32_0 : i32, i32
  }
  func.func @transform_5(%arg0: i32) -> (i32, i32) {
    %c0_i32 = arith.constant 0 : i32
    %c0_i32_0 = arith.constant 0 : i32
    %c0_i32_1 = arith.constant 0 : i32
    return %c0_i32, %c0_i32_0 : i32, i32
  }
  func.func @transform_6(%arg0: i32) -> (i32, i32) {
    %c0_i32 = arith.constant 0 : i32
    %c0_i32_0 = arith.constant 0 : i32
    %c0_i32_1 = arith.constant 0 : i32
    return %c0_i32, %c0_i32_0 : i32, i32
  }
  func.func @transform_7(%arg0: i32) -> (i32, i32) {
    %c0_i32 = arith.constant 0 : i32
    %c0_i32_0 = arith.constant 0 : i32
    %c0_i32_1 = arith.constant 0 : i32
    return %c0_i32, %c0_i32_0 : i32, i32
  }
  func.func @transform_8(%arg0: i32) -> (i32, i32) {
    %c0_i32 = arith.constant 0 : i32
    %c0_i32_0 = arith.constant 0 : i32
    %c0_i32_1 = arith.constant 0 : i32
    return %c0_i32, %c0_i32_0 : i32, i32
  }
  func.func @transform_9(%arg0: i32) -> (i32, i32) {
    %c0_i32 = arith.constant 0 : i32
    %c0_i32_0 = arith.constant 0 : i32
    %c0_i32_1 = arith.constant 0 : i32
    return %c0_i32, %c0_i32_0 : i32, i32
  }
  func.func @transform_10(%arg0: i32) -> (i32, i32) {
    %c0_i32 = arith.constant 0 : i32
    %c0_i32_0 = arith.constant 0 : i32
    %c0_i32_1 = arith.constant 0 : i32
    return %c0_i32, %c0_i32_0 : i32, i32
  }
  func.func @transform_11(%arg0: i32) -> (i32, i32) {
    %c0_i32 = arith.constant 0 : i32
    %c0_i32_0 = arith.constant 0 : i32
    %c0_i32_1 = arith.constant 0 : i32
    return %c0_i32, %c0_i32_0 : i32, i32
  }
  func.func @transform_12(%arg0: i32) -> (i32, i32) {
    %c0_i32 = arith.constant 0 : i32
    %c0_i32_0 = arith.constant 0 : i32
    %c0_i32_1 = arith.constant 0 : i32
    return %c0_i32, %c0_i32_0 : i32, i32
  }
  func.func @transform_13(%arg0: i32) -> (i32, i32) {
    %c0_i32 = arith.constant 0 : i32
    %c0_i32_0 = arith.constant 0 : i32
    return %arg0, %c0_i32 : i32, i32
  }
}

module attributes {stable_mosaic.version = 11 : i64} {
  func.func @_minmaxbox_kernel(%arg0: i32, %arg1: memref<2x8x32xf32, #tpu.memory_space<vmem>>, %arg2: memref<2x8xf32, #tpu.memory_space<vmem>>, %arg3: memref<2x8xf32, #tpu.memory_space<vmem>>, %arg4: memref<32x64xf32, #tpu.memory_space<vmem>>, %arg5: memref<32x64xf32, #tpu.memory_space<vmem>>, %arg6: memref<1x64xf32, #tpu.memory_space<vmem>>, %arg7: memref<64x16xf32, #tpu.memory_space<vmem>>, %arg8: memref<64x16xf32, #tpu.memory_space<vmem>>, %arg9: memref<1x16xf32, #tpu.memory_space<vmem>>, %arg10: memref<1x16xf32, #tpu.memory_space<vmem>>, %arg11: memref<1x80xf32, #tpu.memory_space<vmem>>, %arg12: memref<1x80xf32, #tpu.memory_space<vmem>>, %arg13: memref<80x128xf32, #tpu.memory_space<vmem>>, %arg14: memref<2x128xf32, #tpu.memory_space<vmem>>) attributes {dimension_semantics = [#tpu.dimension_semantics<parallel>], iteration_bounds = array<i64: 1>, scalar_prefetch = 0 : i64, scratch_operands = 0 : i64, tpu.core_type = #tpu.core_type<tc>, window_params = [{transform_indices = @transform_0, window_bounds = array<i64: 2, 8, 32>}, {transform_indices = @transform_1, window_bounds = array<i64: 2, 8>}, {transform_indices = @transform_2, window_bounds = array<i64: 2, 8>}, {pipeline_mode = #tpu.pipeline_mode<synchronous>, transform_indices = @transform_3, window_bounds = array<i64: 32, 64>}, {pipeline_mode = #tpu.pipeline_mode<synchronous>, transform_indices = @transform_4, window_bounds = array<i64: 32, 64>}, {pipeline_mode = #tpu.pipeline_mode<synchronous>, transform_indices = @transform_5, window_bounds = array<i64: 1, 64>}, {pipeline_mode = #tpu.pipeline_mode<synchronous>, transform_indices = @transform_6, window_bounds = array<i64: 64, 16>}, {pipeline_mode = #tpu.pipeline_mode<synchronous>, transform_indices = @transform_7, window_bounds = array<i64: 64, 16>}, {pipeline_mode = #tpu.pipeline_mode<synchronous>, transform_indices = @transform_8, window_bounds = array<i64: 1, 16>}, {pipeline_mode = #tpu.pipeline_mode<synchronous>, transform_indices = @transform_9, window_bounds = array<i64: 1, 16>}, {pipeline_mode = #tpu.pipeline_mode<synchronous>, transform_indices = @transform_10, window_bounds = array<i64: 1, 80>}, {pipeline_mode = #tpu.pipeline_mode<synchronous>, transform_indices = @transform_11, window_bounds = array<i64: 1, 80>}, {pipeline_mode = #tpu.pipeline_mode<synchronous>, transform_indices = @transform_12, window_bounds = array<i64: 80, 128>}, {transform_indices = @transform_13, window_bounds = array<i64: 2, 128>}]} {
    %c0 = arith.constant 0 : index
    %c0_0 = arith.constant 0 : index
    %c0_1 = arith.constant 0 : index
    %0 = vector.load %arg1[%c0, %c0_0, %c0_1] : memref<2x8x32xf32, #tpu.memory_space<vmem>>, vector<2x8x32xf32>
    %c0_2 = arith.constant 0 : index
    %c0_3 = arith.constant 0 : index
    %1 = vector.load %arg2[%c0_2, %c0_3] : memref<2x8xf32, #tpu.memory_space<vmem>>, vector<2x8xf32>
    %2 = vector.shape_cast %1 : vector<2x8xf32> to vector<2x8x1xf32>
    %3 = vector.broadcast %2 : vector<2x8x1xf32> to vector<2x8x32xf32>
    %4 = arith.mulf %0, %3 : vector<2x8x32xf32>
    %cst = arith.constant dense<0xFF800000> : vector<2x32xf32>
    %5 = vector.multi_reduction <maximumf>, %4, %cst [1] : vector<2x8x32xf32> to vector<2x32xf32>
    %c0_4 = arith.constant 0 : index
    %c0_5 = arith.constant 0 : index
    %6 = vector.load %arg3[%c0_4, %c0_5] : memref<2x8xf32, #tpu.memory_space<vmem>>, vector<2x8xf32>
    %7 = vector.shape_cast %6 : vector<2x8xf32> to vector<2x8x1xf32>
    %8 = vector.broadcast %7 : vector<2x8x1xf32> to vector<2x8x32xf32>
    %9 = arith.mulf %0, %8 : vector<2x8x32xf32>
    %cst_6 = arith.constant dense<0xFF800000> : vector<2x32xf32>
    %10 = vector.multi_reduction <maximumf>, %9, %cst_6 [1] : vector<2x8x32xf32> to vector<2x32xf32>
    %c0_7 = arith.constant 0 : index
    %c0_8 = arith.constant 0 : index
    %11 = vector.load %arg4[%c0_7, %c0_8] : memref<32x64xf32, #tpu.memory_space<vmem>>, vector<32x64xf32>
    %cst_9 = arith.constant dense<0.000000e+00> : vector<2x64xf32>
    %12 = tpu.matmul %5, %11, %cst_9 {dimension_numbers = #tpu.dot_dimension_numbers<[1], [0], [0], [1], [0, 0, 1, 1], [], []>} : vector<2x32xf32>, vector<32x64xf32>, vector<2x64xf32> -> vector<2x64xf32>
    %c0_10 = arith.constant 0 : index
    %c0_11 = arith.constant 0 : index
    %13 = vector.load %arg5[%c0_10, %c0_11] : memref<32x64xf32, #tpu.memory_space<vmem>>, vector<32x64xf32>
    %cst_12 = arith.constant dense<0.000000e+00> : vector<2x64xf32>
    %14 = tpu.matmul %10, %13, %cst_12 {dimension_numbers = #tpu.dot_dimension_numbers<[1], [0], [0], [1], [0, 0, 1, 1], [], []>} : vector<2x32xf32>, vector<32x64xf32>, vector<2x64xf32> -> vector<2x64xf32>
    %15 = arith.addf %12, %14 : vector<2x64xf32>
    %c0_13 = arith.constant 0 : index
    %c0_14 = arith.constant 0 : index
    %16 = vector.load %arg6[%c0_13, %c0_14] : memref<1x64xf32, #tpu.memory_space<vmem>>, vector<1x64xf32>
    %17 = vector.broadcast %16 : vector<1x64xf32> to vector<2x64xf32>
    %18 = arith.addf %15, %17 : vector<2x64xf32>
    %cst_15 = arith.constant 0.000000e+00 : f32
    %19 = vector.broadcast %cst_15 : f32 to vector<2x64xf32>
    %20 = arith.maximumf %18, %19 : vector<2x64xf32>
    %c0_16 = arith.constant 0 : index
    %c0_17 = arith.constant 0 : index
    %21 = vector.load %arg7[%c0_16, %c0_17] : memref<64x16xf32, #tpu.memory_space<vmem>>, vector<64x16xf32>
    %cst_18 = arith.constant dense<0.000000e+00> : vector<2x16xf32>
    %22 = tpu.matmul %20, %21, %cst_18 {dimension_numbers = #tpu.dot_dimension_numbers<[1], [0], [0], [1], [0, 0, 1, 1], [], []>} : vector<2x64xf32>, vector<64x16xf32>, vector<2x16xf32> -> vector<2x16xf32>
    %c0_19 = arith.constant 0 : index
    %c0_20 = arith.constant 0 : index
    %23 = vector.load %arg9[%c0_19, %c0_20] : memref<1x16xf32, #tpu.memory_space<vmem>>, vector<1x16xf32>
    %24 = vector.broadcast %23 : vector<1x16xf32> to vector<2x16xf32>
    %25 = arith.addf %22, %24 : vector<2x16xf32>
    %c0_21 = arith.constant 0 : index
    %c0_22 = arith.constant 0 : index
    %26 = vector.load %arg8[%c0_21, %c0_22] : memref<64x16xf32, #tpu.memory_space<vmem>>, vector<64x16xf32>
    %cst_23 = arith.constant dense<0.000000e+00> : vector<2x16xf32>
    %27 = tpu.matmul %20, %26, %cst_23 {dimension_numbers = #tpu.dot_dimension_numbers<[1], [0], [0], [1], [0, 0, 1, 1], [], []>} : vector<2x64xf32>, vector<64x16xf32>, vector<2x16xf32> -> vector<2x16xf32>
    %c0_24 = arith.constant 0 : index
    %c0_25 = arith.constant 0 : index
    %28 = vector.load %arg10[%c0_24, %c0_25] : memref<1x16xf32, #tpu.memory_space<vmem>>, vector<1x16xf32>
    %29 = vector.broadcast %28 : vector<1x16xf32> to vector<2x16xf32>
    %30 = arith.addf %27, %29 : vector<2x16xf32>
    %31 = arith.minimumf %25, %30 : vector<2x16xf32>
    %32 = arith.maximumf %25, %30 : vector<2x16xf32>
    %33 = tpu.concatenate %31, %31, %31, %31, %31 in 1 : vector<2x16xf32>, vector<2x16xf32>, vector<2x16xf32>, vector<2x16xf32>, vector<2x16xf32> -> vector<2x80xf32>
    %34 = tpu.concatenate %32, %32, %32, %32, %32 in 1 : vector<2x16xf32>, vector<2x16xf32>, vector<2x16xf32>, vector<2x16xf32>, vector<2x16xf32> -> vector<2x80xf32>
    %c0_26 = arith.constant 0 : index
    %c0_27 = arith.constant 0 : index
    %35 = vector.load %arg11[%c0_26, %c0_27] : memref<1x80xf32, #tpu.memory_space<vmem>>, vector<1x80xf32>
    %c0_28 = arith.constant 0 : index
    %c0_29 = arith.constant 0 : index
    %36 = vector.load %arg12[%c0_28, %c0_29] : memref<1x80xf32, #tpu.memory_space<vmem>>, vector<1x80xf32>
    %cst_30 = arith.constant 1.000000e-01 : f32
    %37 = vector.broadcast %cst_30 : f32 to vector<2x80xf32>
    %38 = arith.divf %33, %37 : vector<2x80xf32>
    %cst_31 = arith.constant 1.000000e-01 : f32
    %39 = vector.broadcast %cst_31 : f32 to vector<1x80xf32>
    %40 = arith.divf %35, %39 : vector<1x80xf32>
    %41 = vector.broadcast %40 : vector<1x80xf32> to vector<2x80xf32>
    %42 = arith.maximumf %38, %41 : vector<2x80xf32>
    %43 = vector.broadcast %40 : vector<1x80xf32> to vector<2x80xf32>
    %44 = arith.subf %38, %43 : vector<2x80xf32>
    %45 = math.absf %44 : vector<2x80xf32>
    %cst_32 = arith.constant 0.000000e+00 : f32
    %46 = vector.broadcast %cst_32 : f32 to vector<2x80xf32>
    %47 = arith.subf %46, %45 : vector<2x80xf32>
    %48 = math.exp %47 : vector<2x80xf32>
    %49 = math.log1p %48 : vector<2x80xf32>
    %50 = arith.addf %42, %49 : vector<2x80xf32>
    %cst_33 = arith.constant 1.000000e-01 : f32
    %51 = vector.broadcast %cst_33 : f32 to vector<2x80xf32>
    %52 = arith.mulf %51, %50 : vector<2x80xf32>
    %cst_34 = arith.constant 0.000000e+00 : f32
    %53 = vector.broadcast %cst_34 : f32 to vector<2x80xf32>
    %54 = arith.subf %53, %34 : vector<2x80xf32>
    %cst_35 = arith.constant 1.000000e-01 : f32
    %55 = vector.broadcast %cst_35 : f32 to vector<2x80xf32>
    %56 = arith.divf %54, %55 : vector<2x80xf32>
    %cst_36 = arith.constant 0.000000e+00 : f32
    %57 = vector.broadcast %cst_36 : f32 to vector<1x80xf32>
    %58 = arith.subf %57, %36 : vector<1x80xf32>
    %cst_37 = arith.constant 1.000000e-01 : f32
    %59 = vector.broadcast %cst_37 : f32 to vector<1x80xf32>
    %60 = arith.divf %58, %59 : vector<1x80xf32>
    %61 = vector.broadcast %60 : vector<1x80xf32> to vector<2x80xf32>
    %62 = arith.maximumf %56, %61 : vector<2x80xf32>
    %63 = vector.broadcast %60 : vector<1x80xf32> to vector<2x80xf32>
    %64 = arith.subf %56, %63 : vector<2x80xf32>
    %65 = math.absf %64 : vector<2x80xf32>
    %cst_38 = arith.constant 0.000000e+00 : f32
    %66 = vector.broadcast %cst_38 : f32 to vector<2x80xf32>
    %67 = arith.subf %66, %65 : vector<2x80xf32>
    %68 = math.exp %67 : vector<2x80xf32>
    %69 = math.log1p %68 : vector<2x80xf32>
    %70 = arith.addf %62, %69 : vector<2x80xf32>
    %cst_39 = arith.constant -1.000000e-01 : f32
    %71 = vector.broadcast %cst_39 : f32 to vector<2x80xf32>
    %72 = arith.mulf %71, %70 : vector<2x80xf32>
    %73 = vector.broadcast %35 : vector<1x80xf32> to vector<2x80xf32>
    %74 = arith.maximumf %33, %73 : vector<2x80xf32>
    %75 = arith.maximumf %52, %74 : vector<2x80xf32>
    %76 = vector.broadcast %36 : vector<1x80xf32> to vector<2x80xf32>
    %77 = arith.minimumf %34, %76 : vector<2x80xf32>
    %78 = arith.minimumf %72, %77 : vector<2x80xf32>
    %79 = arith.subf %78, %75 : vector<2x80xf32>
    %cst_40 = arith.constant 0.115443133 : f32
    %80 = vector.broadcast %cst_40 : f32 to vector<2x80xf32>
    %81 = arith.subf %79, %80 : vector<2x80xf32>
    %cst_41 = arith.constant 1.000000e+00 : f32
    %82 = vector.broadcast %cst_41 : f32 to vector<2x80xf32>
    %83 = arith.divf %81, %82 : vector<2x80xf32>
    %cst_42 = arith.constant 0.000000e+00 : f32
    %84 = vector.broadcast %cst_42 : f32 to vector<2x80xf32>
    %85 = arith.maximumf %83, %84 : vector<2x80xf32>
    %86 = math.absf %83 : vector<2x80xf32>
    %cst_43 = arith.constant 0.000000e+00 : f32
    %87 = vector.broadcast %cst_43 : f32 to vector<2x80xf32>
    %88 = arith.subf %87, %86 : vector<2x80xf32>
    %89 = math.exp %88 : vector<2x80xf32>
    %90 = math.log1p %89 : vector<2x80xf32>
    %91 = arith.addf %85, %90 : vector<2x80xf32>
    %cst_44 = arith.constant 1.000000e+00 : f32
    %92 = vector.broadcast %cst_44 : f32 to vector<2x80xf32>
    %93 = arith.mulf %92, %91 : vector<2x80xf32>
    %94 = math.log %93 : vector<2x80xf32>
    %c0_45 = arith.constant 0 : index
    %c0_46 = arith.constant 0 : index
    %95 = vector.load %arg13[%c0_45, %c0_46] : memref<80x128xf32, #tpu.memory_space<vmem>>, vector<80x128xf32>
    %cst_47 = arith.constant dense<0.000000e+00> : vector<2x128xf32>
    %96 = tpu.matmul %94, %95, %cst_47 {dimension_numbers = #tpu.dot_dimension_numbers<[1], [0], [0], [1], [0, 0, 1, 1], [], []>} : vector<2x80xf32>, vector<80x128xf32>, vector<2x128xf32> -> vector<2x128xf32>
    %97 = arith.subf %32, %31 : vector<2x16xf32>
    %cst_48 = arith.constant 0.115443133 : f32
    %98 = vector.broadcast %cst_48 : f32 to vector<2x16xf32>
    %99 = arith.subf %97, %98 : vector<2x16xf32>
    %cst_49 = arith.constant 1.000000e+00 : f32
    %100 = vector.broadcast %cst_49 : f32 to vector<2x16xf32>
    %101 = arith.divf %99, %100 : vector<2x16xf32>
    %cst_50 = arith.constant 0.000000e+00 : f32
    %102 = vector.broadcast %cst_50 : f32 to vector<2x16xf32>
    %103 = arith.maximumf %101, %102 : vector<2x16xf32>
    %104 = math.absf %101 : vector<2x16xf32>
    %cst_51 = arith.constant 0.000000e+00 : f32
    %105 = vector.broadcast %cst_51 : f32 to vector<2x16xf32>
    %106 = arith.subf %105, %104 : vector<2x16xf32>
    %107 = math.exp %106 : vector<2x16xf32>
    %108 = math.log1p %107 : vector<2x16xf32>
    %109 = arith.addf %103, %108 : vector<2x16xf32>
    %cst_52 = arith.constant 1.000000e+00 : f32
    %110 = vector.broadcast %cst_52 : f32 to vector<2x16xf32>
    %111 = arith.mulf %110, %109 : vector<2x16xf32>
    %112 = math.log %111 : vector<2x16xf32>
    %cst_53 = arith.constant dense<0.000000e+00> : vector<2xf32>
    %113 = vector.multi_reduction <add>, %112, %cst_53 [1] : vector<2x16xf32> to vector<2xf32>
    %114 = vector.shape_cast %113 : vector<2xf32> to vector<2x1xf32>
    %115 = vector.broadcast %114 : vector<2x1xf32> to vector<2x128xf32>
    %116 = arith.subf %96, %115 : vector<2x128xf32>
    %c0_54 = arith.constant 0 : index
    %c0_55 = arith.constant 0 : index
    %117 = vector.load %arg14[%c0_54, %c0_55] : memref<2x128xf32, #tpu.memory_space<vmem>>, vector<2x128xf32>
    tpu.vector_store %arg14[%c0_54, %c0_55], %116 {strides = array<i32>} : memref<2x128xf32, #tpu.memory_space<vmem>>, vector<2x128xf32>,
    return
  }
  func.func @transform_0(%arg0: i32) -> (i32, i32, i32) {
    %c0_i32 = arith.constant 0 : i32
    %c0_i32_0 = arith.constant 0 : i32
    %c0_i32_1 = arith.constant 0 : i32
    return %arg0, %c0_i32, %c0_i32_0 : i32, i32, i32
  }
  func.func @transform_1(%arg0: i32) -> (i32, i32) {
    %c0_i32 = arith.constant 0 : i32
    %c0_i32_0 = arith.constant 0 : i32
    return %arg0, %c0_i32 : i32, i32
  }
  func.func @transform_2(%arg0: i32) -> (i32, i32) {
    %c0_i32 = arith.constant 0 : i32
    %c0_i32_0 = arith.constant 0 : i32
    return %arg0, %c0_i32 : i32, i32
  }
  func.func @transform_3(%arg0: i32) -> (i32, i32) {
    %c0_i32 = arith.constant 0 : i32
    %c0_i32_0 = arith.constant 0 : i32
    %c0_i32_1 = arith.constant 0 : i32
    return %c0_i32, %c0_i32_0 : i32, i32
  }
  func.func @transform_4(%arg0: i32) -> (i32, i32) {
    %c0_i32 = arith.constant 0 : i32
    %c0_i32_0 = arith.constant 0 : i32
    %c0_i32_1 = arith.constant 0 : i32
    return %c0_i32, %c0_i32_0 : i32, i32
  }
  func.func @transform_5(%arg0: i32) -> (i32, i32) {
    %c0_i32 = arith.constant 0 : i32
    %c0_i32_0 = arith.constant 0 : i32
    %c0_i32_1 = arith.constant 0 : i32
    return %c0_i32, %c0_i32_0 : i32, i32
  }
  func.func @transform_6(%arg0: i32) -> (i32, i32) {
    %c0_i32 = arith.constant 0 : i32
    %c0_i32_0 = arith.constant 0 : i32
    %c0_i32_1 = arith.constant 0 : i32
    return %c0_i32, %c0_i32_0 : i32, i32
  }
  func.func @transform_7(%arg0: i32) -> (i32, i32) {
    %c0_i32 = arith.constant 0 : i32
    %c0_i32_0 = arith.constant 0 : i32
    %c0_i32_1 = arith.constant 0 : i32
    return %c0_i32, %c0_i32_0 : i32, i32
  }
  func.func @transform_8(%arg0: i32) -> (i32, i32) {
    %c0_i32 = arith.constant 0 : i32
    %c0_i32_0 = arith.constant 0 : i32
    %c0_i32_1 = arith.constant 0 : i32
    return %c0_i32, %c0_i32_0 : i32, i32
  }
  func.func @transform_9(%arg0: i32) -> (i32, i32) {
    %c0_i32 = arith.constant 0 : i32
    %c0_i32_0 = arith.constant 0 : i32
    %c0_i32_1 = arith.constant 0 : i32
    return %c0_i32, %c0_i32_0 : i32, i32
  }
  func.func @transform_10(%arg0: i32) -> (i32, i32) {
    %c0_i32 = arith.constant 0 : i32
    %c0_i32_0 = arith.constant 0 : i32
    %c0_i32_1 = arith.constant 0 : i32
    return %c0_i32, %c0_i32_0 : i32, i32
  }
  func.func @transform_11(%arg0: i32) -> (i32, i32) {
    %c0_i32 = arith.constant 0 : i32
    %c0_i32_0 = arith.constant 0 : i32
    %c0_i32_1 = arith.constant 0 : i32
    return %c0_i32, %c0_i32_0 : i32, i32
  }
  func.func @transform_12(%arg0: i32) -> (i32, i32) {
    %c0_i32 = arith.constant 0 : i32
    %c0_i32_0 = arith.constant 0 : i32
    %c0_i32_1 = arith.constant 0 : i32
    return %c0_i32, %c0_i32_0 : i32, i32
  }
  func.func @transform_13(%arg0: i32) -> (i32, i32) {
    %c0_i32 = arith.constant 0 : i32
    %c0_i32_0 = arith.constant 0 : i32
    return %arg0, %c0_i32 : i32, i32
  }
}

</mosaic_0001>

<bundles_post_ra>
// kernel: tpu_custom_call.1
= control target key start
LH: loop header
LB: loop body
LE: loop exit
PB: predicated region body
PF: predicated region fallthrough
CT: control target
= control target key end

     0   :  { %18 = vsyncpa [#allocation3], 0  ;;  %s1281_s0 = inlined_call_operand.hbm [shape: f32[2,8,32], index: 0, kind: input, shape index: {}]   ;;  %s1282_s1 = inlined_call_operand.vmem [shape: f32[2,8], index: 1, kind: input, shape index: {}]   ;;  %s1283_s2 = inlined_call_operand.vmem [shape: f32[2,8], index: 2, kind: input, shape index: {}]   ;;  %s1284_s3 = inlined_call_operand.vmem [shape: f32[32,64], index: 3, kind: input, shape index: {}]   ;;  %s1285_s4 = inlined_call_operand.vmem [shape: f32[32,64], index: 4, kind: input, shape index: {}]   ;;  %s1286_s5 = inlined_call_operand.vmem [shape: f32[1,64], index: 5, kind: input, shape index: {}]   ;;  %s1287_s6 = inlined_call_operand.vmem [shape: f32[64,16], index: 6, kind: input, shape index: {}]   ;;  %s1288_s7 = inlined_call_operand.vmem [shape: f32[64,16], index: 7, kind: input, shape index: {}]   ;;  %s1289_s8 = inlined_call_operand.vmem [shape: f32[1,16], index: 8, kind: input, shape index: {}]   ;;  %s1290_s9 = inlined_call_operand.vmem [shape: f32[1,16], index: 9, kind: input, shape index: {}]   ;;  %s1291_s10 = inlined_call_operand.vmem [shape: f32[1,80], index: 10, kind: input, shape index: {}]   ;;  %s1292_s11 = inlined_call_operand.vmem [shape: f32[1,80], index: 11, kind: input, shape index: {}]   ;;  %s1293_s12 = inlined_call_operand.vmem [shape: f32[80,128], index: 12, kind: input, shape index: {}]   ;;  %s1294_s13 = inlined_call_operand.hbm [shape: f32[2,128], index: 13, kind: output, shape index: {}]  }
   0x1   :  { %19 = vsyncpa [#allocation4], 0  ;;  %s980_s25 = smov [#allocation2]   ;;  %s932_s29 = scalar_lea.hbm %s1281_s0, 256 }
   0x2   :  { %s25_s26 = sshll.u32 %s980_s25, 4  ;;  %p933_p0 = scmp.ne.s32.totalorder %s1281_s0, %s932_s29  ;;  %s26_s26 = int_to_ptr.vmem [resolvable:$true] %s25_s26 }
   0x3   :  { %p936_p1 = scmp.lt.u32.totalorder %s932_s29, %s1281_s0 }
   0x5   :  { %p938_p2 = pnand %p936_p1, %p933_p0 }
   0x7   :  { %941 = shalt.err (!%p938_p2)
}
   0x8   :  { %s942_s17 = scalar_lea.vmem %s26_s26, 256  ;;  %p947_p4 = scmp.lt.s32.totalorder %s26_s26, %s26_s26 }
   0x9   :  { %p943_p3 = scmp.ne.s32.totalorder %s26_s26, %s942_s17  ;;  %p948_p5 = scmp.lt.s32.totalorder %s942_s17, %s942_s17 }
   0xb   :  { %p949_p6 = por %p948_p5, %p947_p4 }
   0xd   :  { %p950_p7 = pnand %p949_p6, %p943_p3 }
   0xf   :  { %953 = shalt.err (!%p950_p7)
}
  0x10   :  { %s981_s18 = smov 128   ;;  %s982_s19 = smov 8  }
  0x11   :  { %31 = dma.hbm_to_vmem [thread:$0]  %s1281_s0, 256, %s26_s26, [#allocation3], %s981_s18, %s981_s18, %s982_s19  }
  0x12   :  { %976 = dma.done.wait [#allocation3], 256  }
  0x13   :  { %977 = vsyncadd [#allocation3], 4294967040  ;;  %v62_v0 = vlaneseq  ;;  %v93_v4 = vld [vmem:[%s1283_s2] sm:$0x3]  ;;  %v983_v8 = vmov 0.0|0.0   ;;  %v129_v10 = vld [vmem:[%s1285_s4 + $0x8] sm:$0xff] }
  0x14   :  { %v61_v5 = vld [vmem:[%s1282_s1] sm:$0x3]  ;;  %850 = vmatprep.subr.bf16.mxu1 %v983_v8  ;;  %862 = vmatprep.subr.bf16.mxu0 %v983_v8  ;;  %v130_v14 = vld [vmem:[%s1285_s4 + $0x10] sm:$0xff]  ;;  %v131_v15 = vld [vmem:[%s1285_s4 + $0x18] sm:$0xff]  ;;  %vm984_vm0 = vmmov 0   ;;  %v985_v17 = vmov 0.0  }
  0x15   :  { %v63_v1 = vshrl.u32 %v62_v0, 7  ;;  %v128_v9 = vld [vmem:[%s1285_s4] sm:$0xff]  ;;  %v854_v16 = vpack.c.bf16 %v131_v15, %v130_v14  ;;  %775 = vmatprep.mubr.msk.f32.mxu1 %vm984_vm0, %v985_v17  ;;  %805 = vmatprep.mubr.msk.f32.mxu0 %vm984_vm0, %v985_v17  ;;  %v293_v19 = vld [vmem:[%s1287_s6 + $0x8] sm:$0xff]  ;;  %vm78_vm1 = vcmask 261120   ;;  %vm134_vm2 = vcmask 1041409   ;;  %v126_v58 = vld [vmem:[%s1284_s3 + $0x10] sm:$0xff] }
  0x16   :  { %v851_v11 = vpack.c.bf16 %v129_v10, %v128_v9  ;;  %v292_v18 = vld [vmem:[%s1287_s6] sm:$0xff]  ;;  %v60_v26 = vld [vmem:[#allocation2 + $0x8] sm:$0xff]  ;;  %v127_v59 = vld [vmem:[%s1284_s3 + $0x18] sm:$0xff]  ;;  %vm307_vm3 = vcmask 523264   ;;  %s987_s14 = smov 16   ;;  %vm697_vm5 = vcmask 123904  }
  0x17   :  { %v1073_v2 = vsub.s32 0, %v63_v1  ;;  %v71_v3 = vsub.s32 1, %v63_v1  ;;  %v863_v20 = vpack.c.bf16 %v293_v19, %v292_v18  ;;  %v59_v21 = vld [vmem:[#allocation2] sm:$0xff]  ;;  %v125_v51 = vld [vmem:[%s1284_s3 + $0x8] sm:$0xff]  ;;  %v860_v63 = vpack.c.bf16 %v127_v59, %v126_v58  ;;  %v295_v9 = vld [vmem:[%s1287_s6 + $0x18] sm:$0xff] }
  0x18   :  { %852 = vmatpush3.bf16.msra.mxu1 %v851_v11  ;;  %v124_v50 = vld [vmem:[%s1284_s3] sm:$0xff]  ;;  %v382_v1 = vld [vmem:[%s1288_s7 + $0x8] sm:$0xff]  ;;  %v383_v10 = vld [vmem:[%s1288_s7 + $0x10] sm:$0xff]  ;;  %vm481_vm6 = vcmask 130048   ;;  %vm484_vm7 = vcmask 392192   ;;  %vm604_vm11 = vcmask 654336  }
  0x19   :  { %v97_v6 = vrot.slane %v93_v4, %v1073_v2  ;;  %v65_v7 = vrot.slane %v61_v5, %v1073_v2  ;;  %v104_v12 = vrot.slane %v93_v4, %v71_v3  ;;  %v72_v13 = vrot.slane %v61_v5, %v71_v3  ;;  %853 = vmatprep.subr.bf16.mxu1 %v983_v8  ;;  %v381_v0 = vld [vmem:[%s1288_s7] sm:$0xff]  ;;  %v297_v15 = vld [vmem:[%s1287_s6 + $0x28] sm:$0xff] }
  0x1a   :  { %864 = vmatpush3.bf16.msra.mxu0 %v863_v20  ;;  %v857_v57 = vpack.c.bf16 %v125_v51, %v124_v50  ;;  %v875_v5 = vpack.c.bf16 %v382_v1, %v381_v0  ;;  %v296_v14 = vld [vmem:[%s1287_s6 + $0x20] sm:$0xff]  ;;  %v386_v19 = vld [vmem:[%s1288_s7 + $0x28] sm:$0xff] }
  0x1b   :  { %99 = vbcast.lane.b32.xlu0 %v97_v6, 256  ;;  %67 = vbcast.lane.b32.xlu1 %v65_v7, 256  ;;  %v294_v7 = vld [vmem:[%s1287_s6 + $0x10] sm:$0xff]  ;;  %v869_v18 = vpack.c.bf16 %v297_v15, %v296_v14  ;;  %v595_v0 = vld [vmem:[%s1293_s12 + $0x8] sm:$0xff] }
  0x1c   :  { %855 = vmatpush3.bf16.msra.mxu1 %v854_v16  ;;  %865 = vmatprep.subr.bf16.mxu0 %v983_v8  ;;  %v866_v11 = vpack.c.bf16 %v295_v9, %v294_v7  ;;  %v385_v16 = vld [vmem:[%s1288_s7 + $0x20] sm:$0xff]  ;;  %v599_v7 = vld [vmem:[%s1293_s12 + $0x28] sm:$0xff] }
  0x1d   :  { %856 = vmatprep.subr.bf16.mxu1 %v983_v8  ;;  %v881_v20 = vpack.c.bf16 %v386_v19, %v385_v16  ;;  %v603_v14 = vld [vmem:[%s1293_s12 + $0x48] sm:$0xff]  ;;  %v1248_v16 = vld [vmem:[%s1292_s11] sm:$0x1] }
  0x1e   :  { %867 = vmatpush3.bf16.msra.mxu0 %v866_v11  ;;  %v601_v11 = vld [vmem:[%s1293_s12 + $0x38] sm:$0xff] }
  0x1f   :  { %106 = vbcast.lane.b32.xlu0 %v104_v12, 256  ;;  %74 = vbcast.lane.b32.xlu1 %v72_v13, 256  ;;  %v384_v12 = vld [vmem:[%s1288_s7 + $0x18] sm:$0xff] }
  0x20   :  { %v878_v13 = vpack.c.bf16 %v384_v12, %v383_v10  ;;  %868 = vmatprep.subr.bf16.mxu0 %v983_v8  ;;  %v600_v10 = vld [vmem:[%s1293_s12 + $0x30] sm:$0xff] }
  0x21   :  { %v896_v12 = vpack.c.bf16 %v601_v11, %v600_v10 }
  0x22   :  { %870 = vmatpush3.bf16.msra.mxu0 %v869_v18 }
  0x23   :  { %871 = vmatprep.subr.bf16.mxu0 %v983_v8 }
  0x8d   :  { %v100_v22 = vpop.permute.xlu0 %99  ;;  %v68_v23 = vpop.permute.xlu1 %67 }
  0x8e   :  { %v108_v24 = vmul.f32 %v100_v22, %v59_v21  ;;  %v76_v25 = vmul.f32 %v68_v23, %v59_v21  ;;  %v298_v21 = vld [vmem:[%s1287_s6 + $0x30] sm:$0xff]  ;;  %v299_v22 = vld [vmem:[%s1287_s6 + $0x38] sm:$0xff] }
  0x8f   :  { %v872_v23 = vpack.c.bf16 %v299_v22, %v298_v21 }
  0x90   :  { %v110_v27 = vsel %vm78_vm1, %v108_v24, -inf  ;;  %v79_v28 = vsel %vm78_vm1, %v76_v25, -inf  ;;  %v387_v24 = vld [vmem:[%s1288_s7 + $0x30] sm:$0xff]  ;;  %v388_v25 = vld [vmem:[%s1288_s7 + $0x38] sm:$0xff] }
  0x91   :  { %v111_v29 = vrot.slane %v110_v27, 4  ;;  %v107_v30 = vpop.permute.xlu0 %106  ;;  %v75_v31 = vpop.permute.xlu1 %74  ;;  %v80_v35 = vrot.slane %v79_v28, 4  ;;  %873 = vmatpush3.bf16.msra.mxu0 %v872_v23 }
  0x92   :  { %v109_v32 = vmul.f32 %v107_v30, %v60_v26  ;;  %v77_v33 = vmul.f32 %v75_v31, %v60_v26  ;;  %v884_v26 = vpack.c.bf16 %v388_v25, %v387_v24  ;;  %886 = vmatprep.subr.bf16.mxu0 %v983_v8  ;;  %v720_v30 = vld [vmem:[%s1286_s5] ss:$0 sm:$0xff]  ;;  %s986_s5 = smov 32  }
  0x93   :  { %v112_v34 = vmax.f32 %v110_v27, %v111_v29  ;;  %v81_v42 = vmax.f32 %v79_v28, %v80_v35  ;;  %v721_v35 = vld [vmem:[%s1289_s8] ss:$0 sm:$0xff]  ;;  %s988_s8 = smov 48  }
  0x94   :  { %v117_v36 = vsel %vm78_vm1, %v109_v32, -inf  ;;  %v86_v37 = vsel %vm78_vm1, %v77_v33, -inf }
  0x95   :  { %v113_v38 = vrot.slane %v112_v34, 2  ;;  %v118_v39 = vrot.slane %v117_v36, 4  ;;  %v87_v40 = vrot.slane %v86_v37, 4  ;;  %v82_v48 = vrot.slane %v81_v42, 2 }
  0x97   :  { %v114_v41 = vmax.f32 %v112_v34, %v113_v38  ;;  %v119_v43 = vmax.f32 %v117_v36, %v118_v39  ;;  %v88_v44 = vmax.f32 %v86_v37, %v87_v40  ;;  %v83_v55 = vmax.f32 %v81_v42, %v82_v48  ;;  %v723_v36 = vld [vmem:[%s1290_s9] ss:$0 sm:$0xff]  ;;  %s989_s9 = smov 64  }
  0x99   :  { %v120_v45 = vrot.slane %v119_v43, 2  ;;  %v89_v46 = vrot.slane %v88_v44, 2  ;;  %v115_v47 = vrot.slane %v114_v41, 1  ;;  %v84_v62 = vrot.slane %v83_v55, 1 }
  0x9b   :  { %v121_v49 = vmax.f32 %v119_v43, %v120_v45  ;;  %v90_v53 = vmax.f32 %v88_v44, %v89_v46  ;;  %v116_v54 = vmax.f32 %v114_v41, %v115_v47  ;;  %v85_v4 = vmax.f32 %v83_v55, %v84_v62 }
  0x9d   :  { %v122_v52 = vrot.slane %v121_v49, 1  ;;  %v91_v60 = vrot.slane %v90_v53, 1 }
  0x9f   :  { %v123_v56 = vmax.f32 %v121_v49, %v122_v52  ;;  %v92_v3 = vmax.f32 %v90_v53, %v91_v60 }
  0xa1   :  { %v135_v61 = vsel %vm134_vm2, %v123_v56, %v116_v54  ;;  %v210_v6 = vsel %vm134_vm2, %v92_v3, %v85_v4  ;;  %v596_v3 = vld [vmem:[%s1293_s12 + $0x10] sm:$0xff]  ;;  %v597_v4 = vld [vmem:[%s1293_s12 + $0x18] sm:$0xff] }
  0xa2   :  { %776 = vmatmul.mubr.msk.f32.vlgmr.msra.gmra.mrb[0].mxu1 %vm78_vm1, %v135_v61 }
  0xa3   :  { %858 = vmatpush3.bf16.msra.mxu1 %v857_v57  ;;  %786 = vmatprep.mubr.msk.f32.mxu1 %vm984_vm0, %v985_v17 }
  0xa4   :  { %859 = vmatprep.subr.bf16.mxu1 %v983_v8 }
  0xa7   :  { %861 = vmatpush3.bf16.msra.mxu1 %v860_v63  ;;  %v594_v63 = vld [vmem:[%s1293_s12] sm:$0xff] }
  0xa8   :  { %874 = vmatprep.subr.bf16.mxu1 %v983_v8  ;;  %v887_v1 = vpack.c.bf16 %v595_v0, %v594_v63 }
  0xaa   :  { %787 = vmatmul.mubr.msk.f32.vlgmr.msra.gmra.mrb[2].mxu1 %vm78_vm1, %v210_v6  ;;  %v598_v6 = vld [vmem:[%s1293_s12 + $0x20] sm:$0xff] }
  0xab   :  { %876 = vmatpush3.bf16.msra.mxu1 %v875_v5  ;;  %824 = vmatprep.mubr.msk.f32.mxu1 %vm984_vm0, %v985_v17  ;;  %v890_v5 = vpack.c.bf16 %v597_v4, %v596_v3  ;;  %v893_v9 = vpack.c.bf16 %v599_v7, %v598_v6 }
  0xac   :  { %877 = vmatprep.subr.bf16.mxu1 %v983_v8 }
  0xaf   :  { %879 = vmatpush3.bf16.msra.mxu1 %v878_v13  ;;  %v602_v13 = vld [vmem:[%s1293_s12 + $0x40] sm:$0xff] }
  0xb0   :  { %880 = vmatprep.subr.bf16.mxu1 %v983_v8  ;;  %v899_v15 = vpack.c.bf16 %v603_v14, %v602_v13 }
  0xb3   :  { %882 = vmatpush3.bf16.msra.mxu1 %v881_v20  ;;  %v534_v20 = vsub.f32 0.0, %v1248_v16 }
  0xb4   :  { %883 = vmatprep.subr.bf16.mxu1 %v983_v8 }
  0xb5   :  { %v535_v24 = vmul.f32 10.0, %v534_v20 }
  0xb7   :  { %885 = vmatpush3.bf16.msra.mxu1 %v884_v26 }
 0x175   :  { %v204_v27 = vpop.f32.mrb[0].mxu1 }
 0x176   :  { %v777_v28 = vpop.f32.mrb[1].mxu1 }
 0x17d   :  { %v279_v29 = vpop.f32.mrb[2].mxu1 }
 0x17e   :  { %v280_v31 = vadd.f32 %v279_v29, %v204_v27  ;;  %v788_v32 = vpop.f32.mrb[3].mxu1 }
 0x180   :  { %v290_v33 = vadd.f32 %v720_v30, %v280_v31  ;;  %v540_v31 = vrot.slane %v535_v24, %v1073_v2 }
 0x182   :  { %v291_v34 = vmax.f32 %v290_v33, 0.0 }
 0x184   :  { %806 = vmatmul.mubr.msk.f32.vlgmr.msra.gmra.mrb[0].mxu0 %vm307_vm3, %v291_v34  ;;  %825 = vmatmul.mubr.msk.f32.vlgmr.msra.gmra.mrb[4].mxu1 %vm307_vm3, %v291_v34 }
 0x185   :  { %847 = vmatprep.mubr.msk.f32.mxu0 %vm984_vm0, %v985_v17  ;;  %888 = vmatpush3.bf16.msra.mxu0 %v887_v1 }
 0x186   :  { %889 = vmatprep.subr.bf16.mxu0 %v983_v8 }
 0x189   :  { %891 = vmatpush3.bf16.msra.mxu0 %v890_v5  ;;  %v571_v5 = vrot.slane %v1248_v16, %v1073_v2 }
 0x18a   :  { %892 = vmatprep.subr.bf16.mxu0 %v983_v8 }
 0x18d   :  { %894 = vmatpush3.bf16.msra.mxu0 %v893_v9 }
 0x18e   :  { %895 = vmatprep.subr.bf16.mxu0 %v983_v8 }
 0x191   :  { %897 = vmatpush3.bf16.msra.mxu0 %v896_v12 }
 0x192   :  { %898 = vmatprep.subr.bf16.mxu0 %v983_v8  ;;  %v504_v8 = vld [vmem:[%s1291_s10] sm:$0x1]  ;;  %s990_s10 = smov [#allocation5]  }
 0x193   :  { %v508_v30 = vmul.f32 10.0, %v504_v8  ;;  %v563_v6 = vrot.slane %v504_v8, %v1073_v2  ;;  %s709_s11 = sshll.u32 %s990_s10, 4  ;;  %s710_s11 = int_to_ptr.vmem [resolvable:$true] %s709_s11 }
 0x194   :  { %p959_p9 = scmp.lt.s32.totalorder %s710_s11, %s710_s11 }
 0x195   :  { %900 = vmatpush3.bf16.msra.mxu0 %v899_v15 }
 0x257   :  { %v377_v37 = vpop.f32.mrb[0].mxu0  ;;  %v462_v38 = vpop.f32.mrb[4].mxu1 }
 0x258   :  { %v378_v39 = vadd.f32 %v721_v35, %v377_v37  ;;  %v463_v40 = vadd.f32 %v723_v36, %v462_v38  ;;  %v807_v41 = vpop.f32.mrb[1].mxu0  ;;  %v826_v42 = vpop.f32.mrb[5].mxu1  ;;  %v513_v38 = vrot.slane %v508_v30, %v1073_v2 }
 0x25a   :  { %v1197_v43 = vmin.f32 %v378_v39, %v463_v40  ;;  %v1199_v44 = vmax.f32 %v378_v39, %v463_v40 }
 0x25c   :  { %491 = vrot.lane.b32.xlu1 %v1199_v44, %s986_s5  ;;  %488 = vrot.lane.b32.xlu0 %v1199_v44, %s987_s14  ;;  %v678_v17 = vsub.f32 %v1199_v44, %v1197_v43 }
 0x25e   :  { %v727_v45 = vadd.f32 -0.11544313, %v678_v17 }
 0x260   :  { %494 = vrot.lane.b32.xlu1 %v1199_v44, %s988_s8  ;;  %469 = vrot.lane.b32.xlu0 %v1197_v43, %s987_s14  ;;  %v681_v46 = vand.u32 2147483647, %v727_v45  ;;  %v680_v57 = vmax.f32 %v727_v45, 0.0 }
 0x262   :  { %v682_v47 = vsub.f32 0.0, %v681_v46 }
 0x264   :  { %497 = vrot.lane.b32.xlu1 %v1199_v44, %s989_s9  ;;  %472 = vrot.lane.b32.xlu0 %v1197_v43, %s986_s5  ;;  %v683_v48 = vmul.f32 1.442695, %v682_v47  ;;  %s954_s5 = scalar_lea.vmem %s710_s11, 32 }
 0x265   :  { %p955_p8 = scmp.ne.s32.totalorder %s710_s11, %s954_s5  ;;  %p960_p10 = scmp.lt.s32.totalorder %s954_s5, %s954_s5 }
 0x266   :  { %912 = vpow2.f32 %v683_v48 }
 0x267   :  { %p961_p11 = por %p960_p10, %p959_p9 }
 0x268   :  { %478 = vrot.lane.b32.xlu1 %v1197_v43, %s989_s9  ;;  %475 = vrot.lane.b32.xlu0 %v1197_v43, %s988_s8 }
 0x269   :  { %p962_p12 = pnand %p961_p11, %p955_p8 }
 0x270   :  { %v913_v49 = vpop.eup %912 }
 0x271   :  { %v685_v50 = vadd.f32 1.0, %v913_v49  ;;  %v688_v51 = vmul.f32 -0.5, %v913_v49  ;;  %v691_v53 = vand.u32 2147483647, %v913_v49 }
 0x273   :  { %914 = vlog2.f32 %v685_v50  ;;  %v689_v52 = vadd.f32 1.0, %v688_v51  ;;  %vm692_vm4 = vcmp.lt.f32.partialorder %v691_v53, 0.0004427343 }
 0x275   :  { %v690_v56 = vmul.f32 %v913_v49, %v689_v52 }
 0x27d   :  { %v915_v54 = vpop.eup %914 }
 0x27e   :  { %v687_v55 = vmul.f32 0.6931472, %v915_v54 }
 0x280   :  { %v693_v58 = vsel %vm692_vm4, %v690_v56, %v687_v55 }
 0x281   :  { %v694_v59 = vadd.f32 %v693_v58, %v680_v57 }
 0x283   :  { %916 = vlog2.f32 %v694_v59 }
 0x28d   :  { %v917_v60 = vpop.eup %916 }
 0x28e   :  { %v696_v61 = vmul.f32 0.6931472, %v917_v60 }
 0x290   :  { %v698_v62 = vsel %vm697_vm5, %v696_v61, 0.0 }
 0x291   :  { %699 = vadd.xlane.f32.xlu0 %v698_v62 }
 0x2ce   :  { %v492_v18 = vpop.permute.xlu1 %491  ;;  %v489_v19 = vpop.permute.xlu0 %488 }
 0x2cf   :  { %v500_v21 = vsel %vm481_vm6, %v1199_v44, %v489_v19 }
 0x2d0   :  { %v501_v25 = vsel %vm78_vm1, %v500_v21, %v492_v18 }
 0x2d2   :  { %v495_v22 = vpop.permute.xlu1 %494  ;;  %v470_v23 = vpop.permute.xlu0 %469 }
 0x2d3   :  { %v502_v26 = vsel %vm484_vm7, %v501_v25, %v495_v22  ;;  %v482_v33 = vsel %vm481_vm6, %v1197_v43, %v470_v23 }
 0x2d6   :  { %v498_v27 = vpop.permute.xlu1 %497  ;;  %v473_v28 = vpop.permute.xlu0 %472 }
 0x2d7   :  { %v503_v29 = vsel %vm307_vm3, %v502_v26, %v498_v27  ;;  %v483_v35 = vsel %vm78_vm1, %v482_v33, %v473_v28 }
 0x2d8   :  { %v532_v32 = vsub.f32 0.0, %v503_v29  ;;  %v573_v12 = vmin.f32 %v503_v29, %v571_v5 }
 0x2da   :  { %v533_v34 = vmul.f32 10.0, %v532_v32  ;;  %v479_v36 = vpop.permute.xlu1 %478  ;;  %v476_v37 = vpop.permute.xlu0 %475 }
 0x2db   :  { %v485_v39 = vsel %vm484_vm7, %v483_v35, %v476_v37 }
 0x2dc   :  { %v543_v40 = vsub.f32 %v533_v34, %v540_v31  ;;  %v486_v41 = vsel %vm307_vm3, %v485_v39, %v479_v36  ;;  %v542_v62 = vmax.f32 %v533_v34, %v540_v31 }
 0x2dd   :  { %v507_v42 = vmul.f32 10.0, %v486_v41  ;;  %v565_v14 = vmax.f32 %v486_v41, %v563_v6 }
 0x2de   :  { %v544_v44 = vand.u32 2147483647, %v543_v40 }
 0x2df   :  { %v516_v17 = vsub.f32 %v507_v42, %v513_v38  ;;  %v515_v7 = vmax.f32 %v507_v42, %v513_v38 }
 0x2e0   :  { %v545_v45 = vsub.f32 0.0, %v544_v44 }
 0x2e1   :  { %v517_v46 = vand.u32 2147483647, %v516_v17 }
 0x2e2   :  { %v546_v47 = vmul.f32 1.442695, %v545_v45 }
 0x2e3   :  { %v518_v48 = vsub.f32 0.0, %v517_v46 }
 0x2e4   :  { %918 = vpow2.f32 %v546_v47 }
 0x2e5   :  { %v519_v43 = vmul.f32 1.442695, %v518_v48 }
 0x2e7   :  { %920 = vpow2.f32 %v519_v43 }
 0x2ee   :  { %v919_v49 = vpop.eup %918 }
 0x2ef   :  { %v548_v50 = vadd.f32 1.0, %v919_v49  ;;  %v551_v53 = vmul.f32 -0.5, %v919_v49  ;;  %v554_v56 = vand.u32 2147483647, %v919_v49 }
 0x2f1   :  { %v921_v51 = vpop.eup %920  ;;  %922 = vlog2.f32 %v548_v50  ;;  %v552_v55 = vadd.f32 1.0, %v551_v53  ;;  %vm555_vm8 = vcmp.lt.f32.partialorder %v554_v56, 0.0004427343 }
 0x2f2   :  { %v521_v52 = vadd.f32 1.0, %v921_v51  ;;  %v524_v54 = vmul.f32 -0.5, %v921_v51  ;;  %v527_v61 = vand.u32 2147483647, %v921_v51 }
 0x2f3   :  { %v553_v60 = vmul.f32 %v919_v49, %v552_v55 }
 0x2f4   :  { %924 = vlog2.f32 %v521_v52  ;;  %v525_v58 = vadd.f32 1.0, %v524_v54  ;;  %vm528_vm9 = vcmp.lt.f32.partialorder %v527_v61, 0.0004427343 }
 0x2f6   :  { %v526_v4 = vmul.f32 %v921_v51, %v525_v58 }
 0x2fb   :  { %v923_v57 = vpop.eup %922 }
 0x2fc   :  { %v550_v59 = vmul.f32 0.6931472, %v923_v57 }
 0x2fe   :  { %v925_v63 = vpop.eup %924  ;;  %v556_v0 = vsel %vm555_vm8, %v553_v60, %v550_v59 }
 0x2ff   :  { %v557_v1 = vadd.f32 %v556_v0, %v542_v62  ;;  %v523_v3 = vmul.f32 0.6931472, %v925_v63 }
 0x301   :  { %v529_v9 = vsel %vm528_vm9, %v526_v4, %v523_v3  ;;  %v558_v10 = vmul.f32 -0.1, %v557_v1 }
 0x302   :  { %v530_v11 = vadd.f32 %v529_v9, %v515_v7 }
 0x303   :  { %v574_v15 = vmin.f32 %v558_v10, %v573_v12 }
 0x304   :  { %v531_v13 = vmul.f32 0.1, %v530_v11 }
 0x306   :  { %v566_v18 = vmax.f32 %v531_v13, %v565_v14 }
 0x308   :  { %v575_v19 = vsub.f32 %v574_v15, %v566_v18 }
 0x30a   :  { %v725_v20 = vadd.f32 -0.11544313, %v575_v19 }
 0x30c   :  { %v578_v21 = vand.u32 2147483647, %v725_v20  ;;  %v577_v29 = vmax.f32 %v725_v20, 0.0 }
 0x30e   :  { %v579_v22 = vsub.f32 0.0, %v578_v21 }
 0x310   :  { %v580_v23 = vmul.f32 1.442695, %v579_v22 }
 0x312   :  { %926 = vpow2.f32 %v580_v23 }
 0x31c   :  { %v927_v24 = vpop.eup %926 }
 0x31d   :  { %v582_v16 = vadd.f32 1.0, %v927_v24  ;;  %v585_v2 = vmul.f32 -0.5, %v927_v24  ;;  %v588_v25 = vand.u32 2147483647, %v927_v24 }
 0x31e   :  { %v700_v34 = vpop.xlane.xlu0 %699 }
 0x31f   :  { %928 = vlog2.f32 %v582_v16  ;;  %v586_v8 = vadd.f32 1.0, %v585_v2  ;;  %vm589_vm10 = vcmp.lt.f32.partialorder %v588_v25, 0.0004427343 }
 0x321   :  { %v587_v28 = vmul.f32 %v927_v24, %v586_v8 }
 0x329   :  { %v929_v26 = vpop.eup %928 }
 0x32a   :  { %v584_v27 = vmul.f32 0.6931472, %v929_v26 }
 0x32c   :  { %v590_v30 = vsel %vm589_vm10, %v587_v28, %v584_v27 }
 0x32d   :  { %v591_v31 = vadd.f32 %v590_v30, %v577_v29 }
 0x32f   :  { %930 = vlog2.f32 %v591_v31 }
 0x339   :  { %v931_v32 = vpop.eup %930 }
 0x33a   :  { %v593_v33 = vmul.f32 0.6931472, %v931_v32 }
 0x33c   :  { %848 = vmatmul.mubr.msk.f32.vlgmr.msra.gmra.mrb[2].mxu0 %vm604_vm11, %v593_v33 }
 0x40f   :  { %v674_v35 = vpop.f32.mrb[2].mxu0 }
 0x410   :  { %v701_v36 = vsub.f32 %v674_v35, %v700_v34  ;;  %v849_v37 = vpop.f32.mrb[3].mxu0 }
 0x412   :  { %702 = vst [vmem:[#allocation5] sm:$0x3] %v701_v36 }
 0x413   :  { %965 = shalt.err (!%p962_p12)
}
 0x414   :  { %s966_s9 = scalar_lea.hbm %s1294_s13, 32 }
 0x415   :  { %p967_p13 = scmp.ne.s32.totalorder %s1294_s13, %s966_s9  ;;  %p970_p0 = scmp.lt.u32.totalorder %s966_s9, %s1294_s13 }
 0x417   :  { %p972_p1 = pnand %p970_p0, %p967_p13 }
 0x419   :  { %975 = shalt.err (!%p972_p1)
}
 0x41a   :  { %712 = dma.vmem_to_hbm [thread:$0]  %s710_s11, 32, %s1294_s13, [#allocation4]  }
 0x41b   :  { %978 = dma.done.wait [#allocation4], 32  }
 0x41c   :  { %979 = vsyncadd [#allocation4], 4294967264 }
 0x41d   :  { %716 = vsyncpa [#allocation3], 1 }
 0x41e   :  { %717 = vsyncpa [#allocation4], 1 }

// kernel: tpu_custom_call.1
= control target key start
LH: loop header
LB: loop body
LE: loop exit
PB: predicated region body
PF: predicated region fallthrough
CT: control target
= control target key end

     0   :  { %18 = vsyncpa [#allocation3], 0  ;;  %s1281_s0 = inlined_call_operand.hbm [shape: f32[2,8,32], index: 0, kind: input, shape index: {}]   ;;  %s1282_s1 = inlined_call_operand.vmem [shape: f32[2,8], index: 1, kind: input, shape index: {}]   ;;  %s1283_s2 = inlined_call_operand.vmem [shape: f32[2,8], index: 2, kind: input, shape index: {}]   ;;  %s1284_s3 = inlined_call_operand.vmem [shape: f32[32,64], index: 3, kind: input, shape index: {}]   ;;  %s1285_s4 = inlined_call_operand.vmem [shape: f32[32,64], index: 4, kind: input, shape index: {}]   ;;  %s1286_s5 = inlined_call_operand.vmem [shape: f32[1,64], index: 5, kind: input, shape index: {}]   ;;  %s1287_s6 = inlined_call_operand.vmem [shape: f32[64,16], index: 6, kind: input, shape index: {}]   ;;  %s1288_s7 = inlined_call_operand.vmem [shape: f32[64,16], index: 7, kind: input, shape index: {}]   ;;  %s1289_s8 = inlined_call_operand.vmem [shape: f32[1,16], index: 8, kind: input, shape index: {}]   ;;  %s1290_s9 = inlined_call_operand.vmem [shape: f32[1,16], index: 9, kind: input, shape index: {}]   ;;  %s1291_s10 = inlined_call_operand.vmem [shape: f32[1,80], index: 10, kind: input, shape index: {}]   ;;  %s1292_s11 = inlined_call_operand.vmem [shape: f32[1,80], index: 11, kind: input, shape index: {}]   ;;  %s1293_s12 = inlined_call_operand.vmem [shape: f32[80,128], index: 12, kind: input, shape index: {}]   ;;  %s1294_s13 = inlined_call_operand.hbm [shape: f32[2,128], index: 13, kind: output, shape index: {}]  }
   0x1   :  { %19 = vsyncpa [#allocation4], 0  ;;  %s980_s25 = smov [#allocation2]   ;;  %s932_s29 = scalar_lea.hbm %s1281_s0, 256 }
   0x2   :  { %s25_s26 = sshll.u32 %s980_s25, 4  ;;  %p933_p0 = scmp.ne.s32.totalorder %s1281_s0, %s932_s29  ;;  %s26_s26 = int_to_ptr.vmem [resolvable:$true] %s25_s26 }
   0x3   :  { %p936_p1 = scmp.lt.u32.totalorder %s932_s29, %s1281_s0 }
   0x5   :  { %p938_p2 = pnand %p936_p1, %p933_p0 }
   0x7   :  { %941 = shalt.err (!%p938_p2)
}
   0x8   :  { %s942_s17 = scalar_lea.vmem %s26_s26, 256  ;;  %p947_p4 = scmp.lt.s32.totalorder %s26_s26, %s26_s26 }
   0x9   :  { %p943_p3 = scmp.ne.s32.totalorder %s26_s26, %s942_s17  ;;  %p948_p5 = scmp.lt.s32.totalorder %s942_s17, %s942_s17 }
   0xb   :  { %p949_p6 = por %p948_p5, %p947_p4 }
   0xd   :  { %p950_p7 = pnand %p949_p6, %p943_p3 }
   0xf   :  { %953 = shalt.err (!%p950_p7)
}
  0x10   :  { %s981_s18 = smov 128   ;;  %s982_s19 = smov 8  }
  0x11   :  { %31 = dma.hbm_to_vmem [thread:$0]  %s1281_s0, 256, %s26_s26, [#allocation3], %s981_s18, %s981_s18, %s982_s19  }
  0x12   :  { %976 = dma.done.wait [#allocation3], 256  }
  0x13   :  { %977 = vsyncadd [#allocation3], 4294967040  ;;  %v62_v0 = vlaneseq  ;;  %v93_v4 = vld [vmem:[%s1283_s2] sm:$0x3]  ;;  %v983_v8 = vmov 0.0|0.0   ;;  %v129_v10 = vld [vmem:[%s1285_s4 + $0x8] sm:$0xff] }
  0x14   :  { %v61_v5 = vld [vmem:[%s1282_s1] sm:$0x3]  ;;  %850 = vmatprep.subr.bf16.mxu1 %v983_v8  ;;  %862 = vmatprep.subr.bf16.mxu0 %v983_v8  ;;  %v130_v14 = vld [vmem:[%s1285_s4 + $0x10] sm:$0xff]  ;;  %v131_v15 = vld [vmem:[%s1285_s4 + $0x18] sm:$0xff]  ;;  %vm984_vm0 = vmmov 0   ;;  %v985_v17 = vmov 0.0  }
  0x15   :  { %v63_v1 = vshrl.u32 %v62_v0, 7  ;;  %v128_v9 = vld [vmem:[%s1285_s4] sm:$0xff]  ;;  %v854_v16 = vpack.c.bf16 %v131_v15, %v130_v14  ;;  %775 = vmatprep.mubr.msk.f32.mxu1 %vm984_vm0, %v985_v17  ;;  %805 = vmatprep.mubr.msk.f32.mxu0 %vm984_vm0, %v985_v17  ;;  %v293_v19 = vld [vmem:[%s1287_s6 + $0x8] sm:$0xff]  ;;  %vm78_vm1 = vcmask 261120   ;;  %vm134_vm2 = vcmask 1041409   ;;  %v126_v58 = vld [vmem:[%s1284_s3 + $0x10] sm:$0xff] }
  0x16   :  { %v851_v11 = vpack.c.bf16 %v129_v10, %v128_v9  ;;  %v292_v18 = vld [vmem:[%s1287_s6] sm:$0xff]  ;;  %v60_v26 = vld [vmem:[#allocation2 + $0x8] sm:$0xff]  ;;  %v127_v59 = vld [vmem:[%s1284_s3 + $0x18] sm:$0xff]  ;;  %vm307_vm3 = vcmask 523264   ;;  %s987_s14 = smov 16   ;;  %vm697_vm5 = vcmask 123904  }
  0x17   :  { %v1073_v2 = vsub.s32 0, %v63_v1  ;;  %v71_v3 = vsub.s32 1, %v63_v1  ;;  %v863_v20 = vpack.c.bf16 %v293_v19, %v292_v18  ;;  %v59_v21 = vld [vmem:[#allocation2] sm:$0xff]  ;;  %v125_v51 = vld [vmem:[%s1284_s3 + $0x8] sm:$0xff]  ;;  %v860_v63 = vpack.c.bf16 %v127_v59, %v126_v58  ;;  %v295_v9 = vld [vmem:[%s1287_s6 + $0x18] sm:$0xff] }
  0x18   :  { %852 = vmatpush3.bf16.msra.mxu1 %v851_v11  ;;  %v124_v50 = vld [vmem:[%s1284_s3] sm:$0xff]  ;;  %v382_v1 = vld [vmem:[%s1288_s7 + $0x8] sm:$0xff]  ;;  %v383_v10 = vld [vmem:[%s1288_s7 + $0x10] sm:$0xff]  ;;  %vm481_vm6 = vcmask 130048   ;;  %vm484_vm7 = vcmask 392192   ;;  %vm604_vm11 = vcmask 654336  }
  0x19   :  { %v97_v6 = vrot.slane %v93_v4, %v1073_v2  ;;  %v65_v7 = vrot.slane %v61_v5, %v1073_v2  ;;  %v104_v12 = vrot.slane %v93_v4, %v71_v3  ;;  %v72_v13 = vrot.slane %v61_v5, %v71_v3  ;;  %853 = vmatprep.subr.bf16.mxu1 %v983_v8  ;;  %v381_v0 = vld [vmem:[%s1288_s7] sm:$0xff]  ;;  %v297_v15 = vld [vmem:[%s1287_s6 + $0x28] sm:$0xff] }
  0x1a   :  { %864 = vmatpush3.bf16.msra.mxu0 %v863_v20  ;;  %v857_v57 = vpack.c.bf16 %v125_v51, %v124_v50  ;;  %v875_v5 = vpack.c.bf16 %v382_v1, %v381_v0  ;;  %v296_v14 = vld [vmem:[%s1287_s6 + $0x20] sm:$0xff]  ;;  %v386_v19 = vld [vmem:[%s1288_s7 + $0x28] sm:$0xff] }
  0x1b   :  { %99 = vbcast.lane.b32.xlu0 %v97_v6, 256  ;;  %67 = vbcast.lane.b32.xlu1 %v65_v7, 256  ;;  %v294_v7 = vld [vmem:[%s1287_s6 + $0x10] sm:$0xff]  ;;  %v869_v18 = vpack.c.bf16 %v297_v15, %v296_v14  ;;  %v595_v0 = vld [vmem:[%s1293_s12 + $0x8] sm:$0xff] }
  0x1c   :  { %855 = vmatpush3.bf16.msra.mxu1 %v854_v16  ;;  %865 = vmatprep.subr.bf16.mxu0 %v983_v8  ;;  %v866_v11 = vpack.c.bf16 %v295_v9, %v294_v7  ;;  %v385_v16 = vld [vmem:[%s1288_s7 + $0x20] sm:$0xff]  ;;  %v599_v7 = vld [vmem:[%s1293_s12 + $0x28] sm:$0xff] }
  0x1d   :  { %856 = vmatprep.subr.bf16.mxu1 %v983_v8  ;;  %v881_v20 = vpack.c.bf16 %v386_v19, %v385_v16  ;;  %v603_v14 = vld [vmem:[%s1293_s12 + $0x48] sm:$0xff]  ;;  %v1248_v16 = vld [vmem:[%s1292_s11] sm:$0x1] }
  0x1e   :  { %867 = vmatpush3.bf16.msra.mxu0 %v866_v11  ;;  %v601_v11 = vld [vmem:[%s1293_s12 + $0x38] sm:$0xff] }
  0x1f   :  { %106 = vbcast.lane.b32.xlu0 %v104_v12, 256  ;;  %74 = vbcast.lane.b32.xlu1 %v72_v13, 256  ;;  %v384_v12 = vld [vmem:[%s1288_s7 + $0x18] sm:$0xff] }
  0x20   :  { %v878_v13 = vpack.c.bf16 %v384_v12, %v383_v10  ;;  %868 = vmatprep.subr.bf16.mxu0 %v983_v8  ;;  %v600_v10 = vld [vmem:[%s1293_s12 + $0x30] sm:$0xff] }
  0x21   :  { %v896_v12 = vpack.c.bf16 %v601_v11, %v600_v10 }
  0x22   :  { %870 = vmatpush3.bf16.msra.mxu0 %v869_v18 }
  0x23   :  { %871 = vmatprep.subr.bf16.mxu0 %v983_v8 }
  0x8d   :  { %v100_v22 = vpop.permute.xlu0 %99  ;;  %v68_v23 = vpop.permute.xlu1 %67 }
  0x8e   :  { %v108_v24 = vmul.f32 %v100_v22, %v59_v21  ;;  %v76_v25 = vmul.f32 %v68_v23, %v59_v21  ;;  %v298_v21 = vld [vmem:[%s1287_s6 + $0x30] sm:$0xff]  ;;  %v299_v22 = vld [vmem:[%s1287_s6 + $0x38] sm:$0xff] }
  0x8f   :  { %v872_v23 = vpack.c.bf16 %v299_v22, %v298_v21 }
  0x90   :  { %v110_v27 = vsel %vm78_vm1, %v108_v24, -inf  ;;  %v79_v28 = vsel %vm78_vm1, %v76_v25, -inf  ;;  %v387_v24 = vld [vmem:[%s1288_s7 + $0x30] sm:$0xff]  ;;  %v388_v25 = vld [vmem:[%s1288_s7 + $0x38] sm:$0xff] }
  0x91   :  { %v111_v29 = vrot.slane %v110_v27, 4  ;;  %v107_v30 = vpop.permute.xlu0 %106  ;;  %v75_v31 = vpop.permute.xlu1 %74  ;;  %v80_v35 = vrot.slane %v79_v28, 4  ;;  %873 = vmatpush3.bf16.msra.mxu0 %v872_v23 }
  0x92   :  { %v109_v32 = vmul.f32 %v107_v30, %v60_v26  ;;  %v77_v33 = vmul.f32 %v75_v31, %v60_v26  ;;  %v884_v26 = vpack.c.bf16 %v388_v25, %v387_v24  ;;  %886 = vmatprep.subr.bf16.mxu0 %v983_v8  ;;  %v720_v30 = vld [vmem:[%s1286_s5] ss:$0 sm:$0xff]  ;;  %s986_s5 = smov 32  }
  0x93   :  { %v112_v34 = vmax.f32 %v110_v27, %v111_v29  ;;  %v81_v42 = vmax.f32 %v79_v28, %v80_v35  ;;  %v721_v35 = vld [vmem:[%s1289_s8] ss:$0 sm:$0xff]  ;;  %s988_s8 = smov 48  }
  0x94   :  { %v117_v36 = vsel %vm78_vm1, %v109_v32, -inf  ;;  %v86_v37 = vsel %vm78_vm1, %v77_v33, -inf }
  0x95   :  { %v113_v38 = vrot.slane %v112_v34, 2  ;;  %v118_v39 = vrot.slane %v117_v36, 4  ;;  %v87_v40 = vrot.slane %v86_v37, 4  ;;  %v82_v48 = vrot.slane %v81_v42, 2 }
  0x97   :  { %v114_v41 = vmax.f32 %v112_v34, %v113_v38  ;;  %v119_v43 = vmax.f32 %v117_v36, %v118_v39  ;;  %v88_v44 = vmax.f32 %v86_v37, %v87_v40  ;;  %v83_v55 = vmax.f32 %v81_v42, %v82_v48  ;;  %v723_v36 = vld [vmem:[%s1290_s9] ss:$0 sm:$0xff]  ;;  %s989_s9 = smov 64  }
  0x99   :  { %v120_v45 = vrot.slane %v119_v43, 2  ;;  %v89_v46 = vrot.slane %v88_v44, 2  ;;  %v115_v47 = vrot.slane %v114_v41, 1  ;;  %v84_v62 = vrot.slane %v83_v55, 1 }
  0x9b   :  { %v121_v49 = vmax.f32 %v119_v43, %v120_v45  ;;  %v90_v53 = vmax.f32 %v88_v44, %v89_v46  ;;  %v116_v54 = vmax.f32 %v114_v41, %v115_v47  ;;  %v85_v4 = vmax.f32 %v83_v55, %v84_v62 }
  0x9d   :  { %v122_v52 = vrot.slane %v121_v49, 1  ;;  %v91_v60 = vrot.slane %v90_v53, 1 }
  0x9f   :  { %v123_v56 = vmax.f32 %v121_v49, %v122_v52  ;;  %v92_v3 = vmax.f32 %v90_v53, %v91_v60 }
  0xa1   :  { %v135_v61 = vsel %vm134_vm2, %v123_v56, %v116_v54  ;;  %v210_v6 = vsel %vm134_vm2, %v92_v3, %v85_v4  ;;  %v596_v3 = vld [vmem:[%s1293_s12 + $0x10] sm:$0xff]  ;;  %v597_v4 = vld [vmem:[%s1293_s12 + $0x18] sm:$0xff] }
  0xa2   :  { %776 = vmatmul.mubr.msk.f32.vlgmr.msra.gmra.mrb[0].mxu1 %vm78_vm1, %v135_v61 }
  0xa3   :  { %858 = vmatpush3.bf16.msra.mxu1 %v857_v57  ;;  %786 = vmatprep.mubr.msk.f32.mxu1 %vm984_vm0, %v985_v17 }
  0xa4   :  { %859 = vmatprep.subr.bf16.mxu1 %v983_v8 }
  0xa7   :  { %861 = vmatpush3.bf16.msra.mxu1 %v860_v63  ;;  %v594_v63 = vld [vmem:[%s1293_s12] sm:$0xff] }
  0xa8   :  { %874 = vmatprep.subr.bf16.mxu1 %v983_v8  ;;  %v887_v1 = vpack.c.bf16 %v595_v0, %v594_v63 }
  0xaa   :  { %787 = vmatmul.mubr.msk.f32.vlgmr.msra.gmra.mrb[2].mxu1 %vm78_vm1, %v210_v6  ;;  %v598_v6 = vld [vmem:[%s1293_s12 + $0x20] sm:$0xff] }
  0xab   :  { %876 = vmatpush3.bf16.msra.mxu1 %v875_v5  ;;  %824 = vmatprep.mubr.msk.f32.mxu1 %vm984_vm0, %v985_v17  ;;  %v890_v5 = vpack.c.bf16 %v597_v4, %v596_v3  ;;  %v893_v9 = vpack.c.bf16 %v599_v7, %v598_v6 }
  0xac   :  { %877 = vmatprep.subr.bf16.mxu1 %v983_v8 }
  0xaf   :  { %879 = vmatpush3.bf16.msra.mxu1 %v878_v13  ;;  %v602_v13 = vld [vmem:[%s1293_s12 + $0x40] sm:$0xff] }
  0xb0   :  { %880 = vmatprep.subr.bf16.mxu1 %v983_v8  ;;  %v899_v15 = vpack.c.bf16 %v603_v14, %v602_v13 }
  0xb3   :  { %882 = vmatpush3.bf16.msra.mxu1 %v881_v20  ;;  %v534_v20 = vsub.f32 0.0, %v1248_v16 }
  0xb4   :  { %883 = vmatprep.subr.bf16.mxu1 %v983_v8 }
  0xb5   :  { %v535_v24 = vmul.f32 10.0, %v534_v20 }
  0xb7   :  { %885 = vmatpush3.bf16.msra.mxu1 %v884_v26 }
 0x175   :  { %v204_v27 = vpop.f32.mrb[0].mxu1 }
 0x176   :  { %v777_v28 = vpop.f32.mrb[1].mxu1 }
 0x17d   :  { %v279_v29 = vpop.f32.mrb[2].mxu1 }
 0x17e   :  { %v280_v31 = vadd.f32 %v279_v29, %v204_v27  ;;  %v788_v32 = vpop.f32.mrb[3].mxu1 }
 0x180   :  { %v290_v33 = vadd.f32 %v720_v30, %v280_v31  ;;  %v540_v31 = vrot.slane %v535_v24, %v1073_v2 }
 0x182   :  { %v291_v34 = vmax.f32 %v290_v33, 0.0 }
 0x184   :  { %806 = vmatmul.mubr.msk.f32.vlgmr.msra.gmra.mrb[0].mxu0 %vm307_vm3, %v291_v34  ;;  %825 = vmatmul.mubr.msk.f32.vlgmr.msra.gmra.mrb[4].mxu1 %vm307_vm3, %v291_v34 }
 0x185   :  { %847 = vmatprep.mubr.msk.f32.mxu0 %vm984_vm0, %v985_v17  ;;  %888 = vmatpush3.bf16.msra.mxu0 %v887_v1 }
 0x186   :  { %889 = vmatprep.subr.bf16.mxu0 %v983_v8 }
 0x189   :  { %891 = vmatpush3.bf16.msra.mxu0 %v890_v5  ;;  %v571_v5 = vrot.slane %v1248_v16, %v1073_v2 }
 0x18a   :  { %892 = vmatprep.subr.bf16.mxu0 %v983_v8 }
 0x18d   :  { %894 = vmatpush3.bf16.msra.mxu0 %v893_v9 }
 0x18e   :  { %895 = vmatprep.subr.bf16.mxu0 %v983_v8 }
 0x191   :  { %897 = vmatpush3.bf16.msra.mxu0 %v896_v12 }
 0x192   :  { %898 = vmatprep.subr.bf16.mxu0 %v983_v8  ;;  %v504_v8 = vld [vmem:[%s1291_s10] sm:$0x1]  ;;  %s990_s10 = smov [#allocation5]  }
 0x193   :  { %v508_v30 = vmul.f32 10.0, %v504_v8  ;;  %v563_v6 = vrot.slane %v504_v8, %v1073_v2  ;;  %s709_s11 = sshll.u32 %s990_s10, 4  ;;  %s710_s11 = int_to_ptr.vmem [resolvable:$true] %s709_s11 }
 0x194   :  { %p959_p9 = scmp.lt.s32.totalorder %s710_s11, %s710_s11 }
 0x195   :  { %900 = vmatpush3.bf16.msra.mxu0 %v899_v15 }
 0x257   :  { %v377_v37 = vpop.f32.mrb[0].mxu0  ;;  %v462_v38 = vpop.f32.mrb[4].mxu1 }
 0x258   :  { %v378_v39 = vadd.f32 %v721_v35, %v377_v37  ;;  %v463_v40 = vadd.f32 %v723_v36, %v462_v38  ;;  %v807_v41 = vpop.f32.mrb[1].mxu0  ;;  %v826_v42 = vpop.f32.mrb[5].mxu1  ;;  %v513_v38 = vrot.slane %v508_v30, %v1073_v2 }
 0x25a   :  { %v1197_v43 = vmin.f32 %v378_v39, %v463_v40  ;;  %v1199_v44 = vmax.f32 %v378_v39, %v463_v40 }
 0x25c   :  { %491 = vrot.lane.b32.xlu1 %v1199_v44, %s986_s5  ;;  %488 = vrot.lane.b32.xlu0 %v1199_v44, %s987_s14  ;;  %v678_v17 = vsub.f32 %v1199_v44, %v1197_v43 }
 0x25e   :  { %v727_v45 = vadd.f32 -0.11544313, %v678_v17 }
 0x260   :  { %494 = vrot.lane.b32.xlu1 %v1199_v44, %s988_s8  ;;  %469 = vrot.lane.b32.xlu0 %v1197_v43, %s987_s14  ;;  %v681_v46 = vand.u32 2147483647, %v727_v45  ;;  %v680_v57 = vmax.f32 %v727_v45, 0.0 }
 0x262   :  { %v682_v47 = vsub.f32 0.0, %v681_v46 }
 0x264   :  { %497 = vrot.lane.b32.xlu1 %v1199_v44, %s989_s9  ;;  %472 = vrot.lane.b32.xlu0 %v1197_v43, %s986_s5  ;;  %v683_v48 = vmul.f32 1.442695, %v682_v47  ;;  %s954_s5 = scalar_lea.vmem %s710_s11, 32 }
 0x265   :  { %p955_p8 = scmp.ne.s32.totalorder %s710_s11, %s954_s5  ;;  %p960_p10 = scmp.lt.s32.totalorder %s954_s5, %s954_s5 }
 0x266   :  { %912 = vpow2.f32 %v683_v48 }
 0x267   :  { %p961_p11 = por %p960_p10, %p959_p9 }
 0x268   :  { %478 = vrot.lane.b32.xlu1 %v1197_v43, %s989_s9  ;;  %475 = vrot.lane.b32.xlu0 %v1197_v43, %s988_s8 }
 0x269   :  { %p962_p12 = pnand %p961_p11, %p955_p8 }
 0x270   :  { %v913_v49 = vpop.eup %912 }
 0x271   :  { %v685_v50 = vadd.f32 1.0, %v913_v49  ;;  %v688_v51 = vmul.f32 -0.5, %v913_v49  ;;  %v691_v53 = vand.u32 2147483647, %v913_v49 }
 0x273   :  { %914 = vlog2.f32 %v685_v50  ;;  %v689_v52 = vadd.f32 1.0, %v688_v51  ;;  %vm692_vm4 = vcmp.lt.f32.partialorder %v691_v53, 0.0004427343 }
 0x275   :  { %v690_v56 = vmul.f32 %v913_v49, %v689_v52 }
 0x27d   :  { %v915_v54 = vpop.eup %914 }
 0x27e   :  { %v687_v55 = vmul.f32 0.6931472, %v915_v54 }
 0x280   :  { %v693_v58 = vsel %vm692_vm4, %v690_v56, %v687_v55 }
 0x281   :  { %v694_v59 = vadd.f32 %v693_v58, %v680_v57 }
 0x283   :  { %916 = vlog2.f32 %v694_v59 }
 0x28d   :  { %v917_v60 = vpop.eup %916 }
 0x28e   :  { %v696_v61 = vmul.f32 0.6931472, %v917_v60 }
 0x290   :  { %v698_v62 = vsel %vm697_vm5, %v696_v61, 0.0 }
 0x291   :  { %699 = vadd.xlane.f32.xlu0 %v698_v62 }
 0x2ce   :  { %v492_v18 = vpop.permute.xlu1 %491  ;;  %v489_v19 = vpop.permute.xlu0 %488 }
 0x2cf   :  { %v500_v21 = vsel %vm481_vm6, %v1199_v44, %v489_v19 }
 0x2d0   :  { %v501_v25 = vsel %vm78_vm1, %v500_v21, %v492_v18 }
 0x2d2   :  { %v495_v22 = vpop.permute.xlu1 %494  ;;  %v470_v23 = vpop.permute.xlu0 %469 }
 0x2d3   :  { %v502_v26 = vsel %vm484_vm7, %v501_v25, %v495_v22  ;;  %v482_v33 = vsel %vm481_vm6, %v1197_v43, %v470_v23 }
 0x2d6   :  { %v498_v27 = vpop.permute.xlu1 %497  ;;  %v473_v28 = vpop.permute.xlu0 %472 }
 0x2d7   :  { %v503_v29 = vsel %vm307_vm3, %v502_v26, %v498_v27  ;;  %v483_v35 = vsel %vm78_vm1, %v482_v33, %v473_v28 }
 0x2d8   :  { %v532_v32 = vsub.f32 0.0, %v503_v29  ;;  %v573_v12 = vmin.f32 %v503_v29, %v571_v5 }
 0x2da   :  { %v533_v34 = vmul.f32 10.0, %v532_v32  ;;  %v479_v36 = vpop.permute.xlu1 %478  ;;  %v476_v37 = vpop.permute.xlu0 %475 }
 0x2db   :  { %v485_v39 = vsel %vm484_vm7, %v483_v35, %v476_v37 }
 0x2dc   :  { %v543_v40 = vsub.f32 %v533_v34, %v540_v31  ;;  %v486_v41 = vsel %vm307_vm3, %v485_v39, %v479_v36  ;;  %v542_v62 = vmax.f32 %v533_v34, %v540_v31 }
 0x2dd   :  { %v507_v42 = vmul.f32 10.0, %v486_v41  ;;  %v565_v14 = vmax.f32 %v486_v41, %v563_v6 }
 0x2de   :  { %v544_v44 = vand.u32 2147483647, %v543_v40 }
 0x2df   :  { %v516_v17 = vsub.f32 %v507_v42, %v513_v38  ;;  %v515_v7 = vmax.f32 %v507_v42, %v513_v38 }
 0x2e0   :  { %v545_v45 = vsub.f32 0.0, %v544_v44 }
 0x2e1   :  { %v517_v46 = vand.u32 2147483647, %v516_v17 }
 0x2e2   :  { %v546_v47 = vmul.f32 1.442695, %v545_v45 }
 0x2e3   :  { %v518_v48 = vsub.f32 0.0, %v517_v46 }
 0x2e4   :  { %918 = vpow2.f32 %v546_v47 }
 0x2e5   :  { %v519_v43 = vmul.f32 1.442695, %v518_v48 }
 0x2e7   :  { %920 = vpow2.f32 %v519_v43 }
 0x2ee   :  { %v919_v49 = vpop.eup %918 }
 0x2ef   :  { %v548_v50 = vadd.f32 1.0, %v919_v49  ;;  %v551_v53 = vmul.f32 -0.5, %v919_v49  ;;  %v554_v56 = vand.u32 2147483647, %v919_v49 }
 0x2f1   :  { %v921_v51 = vpop.eup %920  ;;  %922 = vlog2.f32 %v548_v50  ;;  %v552_v55 = vadd.f32 1.0, %v551_v53  ;;  %vm555_vm8 = vcmp.lt.f32.partialorder %v554_v56, 0.0004427343 }
 0x2f2   :  { %v521_v52 = vadd.f32 1.0, %v921_v51  ;;  %v524_v54 = vmul.f32 -0.5, %v921_v51  ;;  %v527_v61 = vand.u32 2147483647, %v921_v51 }
 0x2f3   :  { %v553_v60 = vmul.f32 %v919_v49, %v552_v55 }
 0x2f4   :  { %924 = vlog2.f32 %v521_v52  ;;  %v525_v58 = vadd.f32 1.0, %v524_v54  ;;  %vm528_vm9 = vcmp.lt.f32.partialorder %v527_v61, 0.0004427343 }
 0x2f6   :  { %v526_v4 = vmul.f32 %v921_v51, %v525_v58 }
 0x2fb   :  { %v923_v57 = vpop.eup %922 }
 0x2fc   :  { %v550_v59 = vmul.f32 0.6931472, %v923_v57 }
 0x2fe   :  { %v925_v63 = vpop.eup %924  ;;  %v556_v0 = vsel %vm555_vm8, %v553_v60, %v550_v59 }
 0x2ff   :  { %v557_v1 = vadd.f32 %v556_v0, %v542_v62  ;;  %v523_v3 = vmul.f32 0.6931472, %v925_v63 }
 0x301   :  { %v529_v9 = vsel %vm528_vm9, %v526_v4, %v523_v3  ;;  %v558_v10 = vmul.f32 -0.1, %v557_v1 }
 0x302   :  { %v530_v11 = vadd.f32 %v529_v9, %v515_v7 }
 0x303   :  { %v574_v15 = vmin.f32 %v558_v10, %v573_v12 }
 0x304   :  { %v531_v13 = vmul.f32 0.1, %v530_v11 }
 0x306   :  { %v566_v18 = vmax.f32 %v531_v13, %v565_v14 }
 0x308   :  { %v575_v19 = vsub.f32 %v574_v15, %v566_v18 }
 0x30a   :  { %v725_v20 = vadd.f32 -0.11544313, %v575_v19 }
 0x30c   :  { %v578_v21 = vand.u32 2147483647, %v725_v20  ;;  %v577_v29 = vmax.f32 %v725_v20, 0.0 }
 0x30e   :  { %v579_v22 = vsub.f32 0.0, %v578_v21 }
 0x310   :  { %v580_v23 = vmul.f32 1.442695, %v579_v22 }
 0x312   :  { %926 = vpow2.f32 %v580_v23 }
 0x31c   :  { %v927_v24 = vpop.eup %926 }
 0x31d   :  { %v582_v16 = vadd.f32 1.0, %v927_v24  ;;  %v585_v2 = vmul.f32 -0.5, %v927_v24  ;;  %v588_v25 = vand.u32 2147483647, %v927_v24 }
 0x31e   :  { %v700_v34 = vpop.xlane.xlu0 %699 }
 0x31f   :  { %928 = vlog2.f32 %v582_v16  ;;  %v586_v8 = vadd.f32 1.0, %v585_v2  ;;  %vm589_vm10 = vcmp.lt.f32.partialorder %v588_v25, 0.0004427343 }
 0x321   :  { %v587_v28 = vmul.f32 %v927_v24, %v586_v8 }
 0x329   :  { %v929_v26 = vpop.eup %928 }
 0x32a   :  { %v584_v27 = vmul.f32 0.6931472, %v929_v26 }
 0x32c   :  { %v590_v30 = vsel %vm589_vm10, %v587_v28, %v584_v27 }
 0x32d   :  { %v591_v31 = vadd.f32 %v590_v30, %v577_v29 }
 0x32f   :  { %930 = vlog2.f32 %v591_v31 }
 0x339   :  { %v931_v32 = vpop.eup %930 }
 0x33a   :  { %v593_v33 = vmul.f32 0.6931472, %v931_v32 }
 0x33c   :  { %848 = vmatmul.mubr.msk.f32.vlgmr.msra.gmra.mrb[2].mxu0 %vm604_vm11, %v593_v33 }
 0x40f   :  { %v674_v35 = vpop.f32.mrb[2].mxu0 }
 0x410   :  { %v701_v36 = vsub.f32 %v674_v35, %v700_v34  ;;  %v849_v37 = vpop.f32.mrb[3].mxu0 }
 0x412   :  { %702 = vst [vmem:[#allocation5] sm:$0x3] %v701_v36 }
 0x413   :  { %965 = shalt.err (!%p962_p12)
}
 0x414   :  { %s966_s9 = scalar_lea.hbm %s1294_s13, 32 }
 0x415   :  { %p967_p13 = scmp.ne.s32.totalorder %s1294_s13, %s966_s9  ;;  %p970_p0 = scmp.lt.u32.totalorder %s966_s9, %s1294_s13 }
 0x417   :  { %p972_p1 = pnand %p970_p0, %p967_p13 }
 0x419   :  { %975 = shalt.err (!%p972_p1)
}
 0x41a   :  { %712 = dma.vmem_to_hbm [thread:$0]  %s710_s11, 32, %s1294_s13, [#allocation4]  }
 0x41b   :  { %978 = dma.done.wait [#allocation4], 32  }
 0x41c   :  { %979 = vsyncadd [#allocation4], 4294967264 }
 0x41d   :  { %716 = vsyncpa [#allocation3], 1 }
 0x41e   :  { %717 = vsyncpa [#allocation4], 1 }

</bundles_post_ra>
